<compile_context>
chip_gen: v6e
topology: v6e:2x2x1
jax: 0.10.0
libtpu: 0.0.40
codegen_flags: <defaults>
</compile_context>

<pallas_src>
import jax
import jax.numpy as jnp
from jax.experimental import pallas as pl
from jax.experimental.pallas import tpu as pltpu
import numpy as np

N = 3                 # homography matrix side
NUM_BASIS = 8
NUM_TERMS = 9         # Taylor terms beyond the identity
OUT_LEN = 16          # small 1-D SMEM output (first 9 entries hold H row-major)


# ---- tiny 3x3 scalar-matrix helpers (fully unrolled at trace time) ----------
def _mm3(A, B):
    return [[A[r][0] * B[0][c] + A[r][1] * B[1][c] + A[r][2] * B[2][c]
             for c in range(N)] for r in range(N)]


def _scale3(A, s):
    s = jnp.float32(s)
    return [[A[r][c] * s for c in range(N)] for r in range(N)]


def _add3(A, B):
    return [[A[r][c] + B[r][c] for c in range(N)] for r in range(N)]


def _homography_kernel(s_ref, v1_ref, vL_ref, h_ref):
    # s_ref : SMEM (1,)  int32   -- forward argument `s`
    # v1_ref: SMEM (8,)  f32     -- parameter v1 (flattened)
    # vL_ref: SMEM (8,)  f32     -- parameter vL (flattened)
    # h_ref : SMEM (16,) f32     -- output; H row-major in entries 0..8
    flag = jnp.where(s_ref[0] == 0, jnp.float32(1.0), jnp.float32(0.0))

    # w_k = vL_k + [s == 0] * v1_k        (8 scalar FMAs)
    w = [vL_ref[k] + flag * v1_ref[k] for k in range(NUM_BASIS)]

    # C = sum_k w_k * B[k]   with the fixed sparse basis baked in.
    C = [[w[4],            w[2], w[0]],
         [w[3], -(w[4] + w[5]), w[1]],
         [w[6],            w[7], w[5]]]

    # ---- scaled powers  C^i / i!  (even chain + off-chain odds) -------------
    C2 = _mm3(C, C)

    # Pre-scaled operands: all off the serial dependency chain.
    C_3 = _scale3(C, 1.0 / 3.0)
    C_5 = _scale3(C, 1.0 / 5.0)
    C_7 = _scale3(C, 1.0 / 7.0)
    C_9 = _scale3(C, 1.0 / 9.0)
    C2_34 = _scale3(C2, 1.0 / 12.0)   # 1/(3*4)
    C2_56 = _scale3(C2, 1.0 / 30.0)   # 1/(5*6)
    C2_78 = _scale3(C2, 1.0 / 56.0)   # 1/(7*8)

    E1 = _scale3(C2, 0.5)             # C^2 / 2!
    O1 = _mm3(E1, C_3)                # C^3 / 3!
    E2 = _mm3(E1, C2_34)              # C^4 / 4!
    O2 = _mm3(E2, C_5)                # C^5 / 5!
    E3 = _mm3(E2, C2_56)              # C^6 / 6!
    O3 = _mm3(E3, C_7)                # C^7 / 7!
    E4 = _mm3(E3, C2_78)              # C^8 / 8!
    O4 = _mm3(E4, C_9)                # C^9 / 9!

    # H = I + sum of scaled powers.
    H = [[jnp.float32(1.0) if r == c else jnp.float32(0.0) for c in range(N)]
         for r in range(N)]
    for T in (C, E1, O1, E2, O2, E3, O3, E4, O4):
        H = _add3(H, T)

    # 9 plain scalar stores into SMEM (no masked vector stores, no VMEM tile).
    for r in range(N):
        for c in range(N):
            h_ref[r * N + c] = H[r][c]
    for i in range(N * N, OUT_LEN):
        h_ref[i] = jnp.float32(0.0)


@jax.jit
def homography_net_forward(s, v1, vL):
    """s: int scalar; v1, vL: (8,1,1) f32 parameters.  Returns H (3,3) f32."""
    s_arr = jnp.reshape(jnp.asarray(s, dtype=jnp.int32), (1,))
    v1_flat = jnp.reshape(v1, (NUM_BASIS,)).astype(jnp.float32)
    vL_flat = jnp.reshape(vL, (NUM_BASIS,)).astype(jnp.float32)

    out = pl.pallas_call(
        _homography_kernel,
        out_shape=jax.ShapeDtypeStruct((OUT_LEN,), jnp.float32),
        in_specs=[
            pl.BlockSpec(memory_space=pltpu.MemorySpace.SMEM),   # s
            pl.BlockSpec(memory_space=pltpu.MemorySpace.SMEM),   # v1
            pl.BlockSpec(memory_space=pltpu.MemorySpace.SMEM),   # vL
        ],
        out_specs=pl.BlockSpec(memory_space=pltpu.MemorySpace.SMEM),
    )(s_arr, v1_flat, vL_flat)

    return out[:N * N].reshape(N, N)


def _make_basis():
    """The fixed basis from HomographyNet.__init__ (used only by the reference)."""
    B = np.zeros((NUM_BASIS, N, N), dtype=np.float32)
    B[0, 0, 2] = 1.0
    B[1, 1, 2] = 1.0
    B[2, 0, 1] = 1.0
    B[3, 1, 0] = 1.0
    B[4, 0, 0], B[4, 1, 1] = 1.0, -1.0
    B[5, 1, 1], B[5, 2, 2] = -1.0, 1.0
    B[6, 2, 0] = 1.0
    B[7, 2, 1] = 1.0
    return jnp.asarray(B)


def _reference_forward(s, v1, vL, B):
    """Pure-JAX reference mirroring the PyTorch forward exactly."""
    C = jnp.sum(B * vL.reshape(NUM_BASIS, 1, 1), axis=0)
    if s == 0:
        C = C + jnp.sum(B * v1.reshape(NUM_BASIS, 1, 1), axis=0)
    A = jnp.eye(N, dtype=jnp.float32)
    H = A
    for i in range(1, NUM_TERMS + 1):
        A = (A / jnp.float32(i)) @ C
        H = H + A
    return H


if __name__ == "__main__":
    key = jax.random.PRNGKey(0)
    k1, k2 = jax.random.split(key)

    B = _make_basis()  # fixed basis (reference check only; baked into the kernel)
    # Parameters are zeros in __init__; use small deterministic values so the
    # kernel exercises a non-trivial result.
    v1 = 0.05 * jax.random.normal(k1, (NUM_BASIS, 1, 1), dtype=jnp.float32)
    vL = 0.05 * jax.random.normal(k2, (NUM_BASIS, 1, 1), dtype=jnp.float32)
    s = 0  # matches H = homography_net(0)

    H = homography_net_forward(s, v1, vL)
    H = jax.block_until_ready(H)

    H_ref = _reference_forward(s, v1, vL, B)
    assert np.allclose(np.asarray(H), np.asarray(H_ref), rtol=1e-5, atol=1e-6), (
        "Pallas kernel does not match reference")

    print("KERNEL_OK")
</pallas_src>

<mosaic_0001>
module attributes {stable_mosaic.version = 11 : i64} {
  func.func @_homography_kernel(%arg0: memref<1xi32, #tpu.memory_space<smem>>, %arg1: memref<8xf32, #tpu.memory_space<smem>>, %arg2: memref<8xf32, #tpu.memory_space<smem>>, %arg3: memref<16xf32, #tpu.memory_space<smem>>) attributes {dimension_semantics = [], scalar_prefetch = 0 : i64, scratch_operands = 0 : i64, tpu.core_type = #tpu.core_type<tc>} {
    %c0 = arith.constant 0 : index
    %0 = memref.load %arg0[%c0] : memref<1xi32, #tpu.memory_space<smem>>
    %c0_i32 = arith.constant 0 : i32
    %1 = arith.cmpi eq, %0, %c0_i32 : i32
    %cst = arith.constant 1.000000e+00 : f32
    %cst_0 = arith.constant 0.000000e+00 : f32
    %2 = arith.select %1, %cst, %cst_0 : f32
    %c0_1 = arith.constant 0 : index
    %3 = memref.load %arg2[%c0_1] : memref<8xf32, #tpu.memory_space<smem>>
    %c0_2 = arith.constant 0 : index
    %4 = memref.load %arg1[%c0_2] : memref<8xf32, #tpu.memory_space<smem>>
    %5 = arith.mulf %2, %4 : f32
    %6 = arith.addf %3, %5 : f32
    %c1 = arith.constant 1 : index
    %7 = memref.load %arg2[%c1] : memref<8xf32, #tpu.memory_space<smem>>
    %c1_3 = arith.constant 1 : index
    %8 = memref.load %arg1[%c1_3] : memref<8xf32, #tpu.memory_space<smem>>
    %9 = arith.mulf %2, %8 : f32
    %10 = arith.addf %7, %9 : f32
    %c2 = arith.constant 2 : index
    %11 = memref.load %arg2[%c2] : memref<8xf32, #tpu.memory_space<smem>>
    %c2_4 = arith.constant 2 : index
    %12 = memref.load %arg1[%c2_4] : memref<8xf32, #tpu.memory_space<smem>>
    %13 = arith.mulf %2, %12 : f32
    %14 = arith.addf %11, %13 : f32
    %c3 = arith.constant 3 : index
    %15 = memref.load %arg2[%c3] : memref<8xf32, #tpu.memory_space<smem>>
    %c3_5 = arith.constant 3 : index
    %16 = memref.load %arg1[%c3_5] : memref<8xf32, #tpu.memory_space<smem>>
    %17 = arith.mulf %2, %16 : f32
    %18 = arith.addf %15, %17 : f32
    %c4 = arith.constant 4 : index
    %19 = memref.load %arg2[%c4] : memref<8xf32, #tpu.memory_space<smem>>
    %c4_6 = arith.constant 4 : index
    %20 = memref.load %arg1[%c4_6] : memref<8xf32, #tpu.memory_space<smem>>
    %21 = arith.mulf %2, %20 : f32
    %22 = arith.addf %19, %21 : f32
    %c5 = arith.constant 5 : index
    %23 = memref.load %arg2[%c5] : memref<8xf32, #tpu.memory_space<smem>>
    %c5_7 = arith.constant 5 : index
    %24 = memref.load %arg1[%c5_7] : memref<8xf32, #tpu.memory_space<smem>>
    %25 = arith.mulf %2, %24 : f32
    %26 = arith.addf %23, %25 : f32
    %c6 = arith.constant 6 : index
    %27 = memref.load %arg2[%c6] : memref<8xf32, #tpu.memory_space<smem>>
    %c6_8 = arith.constant 6 : index
    %28 = memref.load %arg1[%c6_8] : memref<8xf32, #tpu.memory_space<smem>>
    %29 = arith.mulf %2, %28 : f32
    %30 = arith.addf %27, %29 : f32
    %c7 = arith.constant 7 : index
    %31 = memref.load %arg2[%c7] : memref<8xf32, #tpu.memory_space<smem>>
    %c7_9 = arith.constant 7 : index
    %32 = memref.load %arg1[%c7_9] : memref<8xf32, #tpu.memory_space<smem>>
    %33 = arith.mulf %2, %32 : f32
    %34 = arith.addf %31, %33 : f32
    %35 = arith.addf %22, %26 : f32
    %cst_10 = arith.constant 0.000000e+00 : f32
    %36 = arith.subf %cst_10, %35 : f32
    %37 = arith.mulf %22, %22 : f32
    %38 = arith.mulf %14, %18 : f32
    %39 = arith.addf %37, %38 : f32
    %40 = arith.mulf %6, %30 : f32
    %41 = arith.addf %39, %40 : f32
    %42 = arith.mulf %22, %14 : f32
    %43 = arith.mulf %14, %36 : f32
    %44 = arith.addf %42, %43 : f32
    %45 = arith.mulf %6, %34 : f32
    %46 = arith.addf %44, %45 : f32
    %47 = arith.mulf %22, %6 : f32
    %48 = arith.mulf %14, %10 : f32
    %49 = arith.addf %47, %48 : f32
    %50 = arith.mulf %6, %26 : f32
    %51 = arith.addf %49, %50 : f32
    %52 = arith.mulf %18, %22 : f32
    %53 = arith.mulf %36, %18 : f32
    %54 = arith.addf %52, %53 : f32
    %55 = arith.mulf %10, %30 : f32
    %56 = arith.addf %54, %55 : f32
    %57 = arith.mulf %18, %14 : f32
    %58 = arith.mulf %36, %36 : f32
    %59 = arith.addf %57, %58 : f32
    %60 = arith.mulf %10, %34 : f32
    %61 = arith.addf %59, %60 : f32
    %62 = arith.mulf %18, %6 : f32
    %63 = arith.mulf %36, %10 : f32
    %64 = arith.addf %62, %63 : f32
    %65 = arith.mulf %10, %26 : f32
    %66 = arith.addf %64, %65 : f32
    %67 = arith.mulf %30, %22 : f32
    %68 = arith.mulf %34, %18 : f32
    %69 = arith.addf %67, %68 : f32
    %70 = arith.mulf %26, %30 : f32
    %71 = arith.addf %69, %70 : f32
    %72 = arith.mulf %30, %14 : f32
    %73 = arith.mulf %34, %36 : f32
    %74 = arith.addf %72, %73 : f32
    %75 = arith.mulf %26, %34 : f32
    %76 = arith.addf %74, %75 : f32
    %77 = arith.mulf %30, %6 : f32
    %78 = arith.mulf %34, %10 : f32
    %79 = arith.addf %77, %78 : f32
    %80 = arith.mulf %26, %26 : f32
    %81 = arith.addf %79, %80 : f32
    %cst_11 = arith.constant 0.333333343 : f32
    %82 = arith.mulf %22, %cst_11 : f32
    %cst_12 = arith.constant 0.333333343 : f32
    %83 = arith.mulf %14, %cst_12 : f32
    %cst_13 = arith.constant 0.333333343 : f32
    %84 = arith.mulf %6, %cst_13 : f32
    %cst_14 = arith.constant 0.333333343 : f32
    %85 = arith.mulf %18, %cst_14 : f32
    %cst_15 = arith.constant 0.333333343 : f32
    %86 = arith.mulf %36, %cst_15 : f32
    %cst_16 = arith.constant 0.333333343 : f32
    %87 = arith.mulf %10, %cst_16 : f32
    %cst_17 = arith.constant 0.333333343 : f32
    %88 = arith.mulf %30, %cst_17 : f32
    %cst_18 = arith.constant 0.333333343 : f32
    %89 = arith.mulf %34, %cst_18 : f32
    %cst_19 = arith.constant 0.333333343 : f32
    %90 = arith.mulf %26, %cst_19 : f32
    %cst_20 = arith.constant 2.000000e-01 : f32
    %91 = arith.mulf %22, %cst_20 : f32
    %cst_21 = arith.constant 2.000000e-01 : f32
    %92 = arith.mulf %14, %cst_21 : f32
    %cst_22 = arith.constant 2.000000e-01 : f32
    %93 = arith.mulf %6, %cst_22 : f32
    %cst_23 = arith.constant 2.000000e-01 : f32
    %94 = arith.mulf %18, %cst_23 : f32
    %cst_24 = arith.constant 2.000000e-01 : f32
    %95 = arith.mulf %36, %cst_24 : f32
    %cst_25 = arith.constant 2.000000e-01 : f32
    %96 = arith.mulf %10, %cst_25 : f32
    %cst_26 = arith.constant 2.000000e-01 : f32
    %97 = arith.mulf %30, %cst_26 : f32
    %cst_27 = arith.constant 2.000000e-01 : f32
    %98 = arith.mulf %34, %cst_27 : f32
    %cst_28 = arith.constant 2.000000e-01 : f32
    %99 = arith.mulf %26, %cst_28 : f32
    %cst_29 = arith.constant 0.142857149 : f32
    %100 = arith.mulf %22, %cst_29 : f32
    %cst_30 = arith.constant 0.142857149 : f32
    %101 = arith.mulf %14, %cst_30 : f32
    %cst_31 = arith.constant 0.142857149 : f32
    %102 = arith.mulf %6, %cst_31 : f32
    %cst_32 = arith.constant 0.142857149 : f32
    %103 = arith.mulf %18, %cst_32 : f32
    %cst_33 = arith.constant 0.142857149 : f32
    %104 = arith.mulf %36, %cst_33 : f32
    %cst_34 = arith.constant 0.142857149 : f32
    %105 = arith.mulf %10, %cst_34 : f32
    %cst_35 = arith.constant 0.142857149 : f32
    %106 = arith.mulf %30, %cst_35 : f32
    %cst_36 = arith.constant 0.142857149 : f32
    %107 = arith.mulf %34, %cst_36 : f32
    %cst_37 = arith.constant 0.142857149 : f32
    %108 = arith.mulf %26, %cst_37 : f32
    %cst_38 = arith.constant 0.111111112 : f32
    %109 = arith.mulf %22, %cst_38 : f32
    %cst_39 = arith.constant 0.111111112 : f32
    %110 = arith.mulf %14, %cst_39 : f32
    %cst_40 = arith.constant 0.111111112 : f32
    %111 = arith.mulf %6, %cst_40 : f32
    %cst_41 = arith.constant 0.111111112 : f32
    %112 = arith.mulf %18, %cst_41 : f32
    %cst_42 = arith.constant 0.111111112 : f32
    %113 = arith.mulf %36, %cst_42 : f32
    %cst_43 = arith.constant 0.111111112 : f32
    %114 = arith.mulf %10, %cst_43 : f32
    %cst_44 = arith.constant 0.111111112 : f32
    %115 = arith.mulf %30, %cst_44 : f32
    %cst_45 = arith.constant 0.111111112 : f32
    %116 = arith.mulf %34, %cst_45 : f32
    %cst_46 = arith.constant 0.111111112 : f32
    %117 = arith.mulf %26, %cst_46 : f32
    %cst_47 = arith.constant 0.0833333358 : f32
    %118 = arith.mulf %41, %cst_47 : f32
    %cst_48 = arith.constant 0.0833333358 : f32
    %119 = arith.mulf %46, %cst_48 : f32
    %cst_49 = arith.constant 0.0833333358 : f32
    %120 = arith.mulf %51, %cst_49 : f32
    %cst_50 = arith.constant 0.0833333358 : f32
    %121 = arith.mulf %56, %cst_50 : f32
    %cst_51 = arith.constant 0.0833333358 : f32
    %122 = arith.mulf %61, %cst_51 : f32
    %cst_52 = arith.constant 0.0833333358 : f32
    %123 = arith.mulf %66, %cst_52 : f32
    %cst_53 = arith.constant 0.0833333358 : f32
    %124 = arith.mulf %71, %cst_53 : f32
    %cst_54 = arith.constant 0.0833333358 : f32
    %125 = arith.mulf %76, %cst_54 : f32
    %cst_55 = arith.constant 0.0833333358 : f32
    %126 = arith.mulf %81, %cst_55 : f32
    %cst_56 = arith.constant 0.0333333351 : f32
    %127 = arith.mulf %41, %cst_56 : f32
    %cst_57 = arith.constant 0.0333333351 : f32
    %128 = arith.mulf %46, %cst_57 : f32
    %cst_58 = arith.constant 0.0333333351 : f32
    %129 = arith.mulf %51, %cst_58 : f32
    %cst_59 = arith.constant 0.0333333351 : f32
    %130 = arith.mulf %56, %cst_59 : f32
    %cst_60 = arith.constant 0.0333333351 : f32
    %131 = arith.mulf %61, %cst_60 : f32
    %cst_61 = arith.constant 0.0333333351 : f32
    %132 = arith.mulf %66, %cst_61 : f32
    %cst_62 = arith.constant 0.0333333351 : f32
    %133 = arith.mulf %71, %cst_62 : f32
    %cst_63 = arith.constant 0.0333333351 : f32
    %134 = arith.mulf %76, %cst_63 : f32
    %cst_64 = arith.constant 0.0333333351 : f32
    %135 = arith.mulf %81, %cst_64 : f32
    %cst_65 = arith.constant 0.0178571437 : f32
    %136 = arith.mulf %41, %cst_65 : f32
    %cst_66 = arith.constant 0.0178571437 : f32
    %137 = arith.mulf %46, %cst_66 : f32
    %cst_67 = arith.constant 0.0178571437 : f32
    %138 = arith.mulf %51, %cst_67 : f32
    %cst_68 = arith.constant 0.0178571437 : f32
    %139 = arith.mulf %56, %cst_68 : f32
    %cst_69 = arith.constant 0.0178571437 : f32
    %140 = arith.mulf %61, %cst_69 : f32
    %cst_70 = arith.constant 0.0178571437 : f32
    %141 = arith.mulf %66, %cst_70 : f32
    %cst_71 = arith.constant 0.0178571437 : f32
    %142 = arith.mulf %71, %cst_71 : f32
    %cst_72 = arith.constant 0.0178571437 : f32
    %143 = arith.mulf %76, %cst_72 : f32
    %cst_73 = arith.constant 0.0178571437 : f32
    %144 = arith.mulf %81, %cst_73 : f32
    %cst_74 = arith.constant 5.000000e-01 : f32
    %145 = arith.mulf %41, %cst_74 : f32
    %cst_75 = arith.constant 5.000000e-01 : f32
    %146 = arith.mulf %46, %cst_75 : f32
    %cst_76 = arith.constant 5.000000e-01 : f32
    %147 = arith.mulf %51, %cst_76 : f32
    %cst_77 = arith.constant 5.000000e-01 : f32
    %148 = arith.mulf %56, %cst_77 : f32
    %cst_78 = arith.constant 5.000000e-01 : f32
    %149 = arith.mulf %61, %cst_78 : f32
    %cst_79 = arith.constant 5.000000e-01 : f32
    %150 = arith.mulf %66, %cst_79 : f32
    %cst_80 = arith.constant 5.000000e-01 : f32
    %151 = arith.mulf %71, %cst_80 : f32
    %cst_81 = arith.constant 5.000000e-01 : f32
    %152 = arith.mulf %76, %cst_81 : f32
    %cst_82 = arith.constant 5.000000e-01 : f32
    %153 = arith.mulf %81, %cst_82 : f32
    %154 = arith.mulf %145, %82 : f32
    %155 = arith.mulf %146, %85 : f32
    %156 = arith.addf %154, %155 : f32
    %157 = arith.mulf %147, %88 : f32
    %158 = arith.addf %156, %157 : f32
    %159 = arith.mulf %145, %83 : f32
    %160 = arith.mulf %146, %86 : f32
    %161 = arith.addf %159, %160 : f32
    %162 = arith.mulf %147, %89 : f32
    %163 = arith.addf %161, %162 : f32
    %164 = arith.mulf %145, %84 : f32
    %165 = arith.mulf %146, %87 : f32
    %166 = arith.addf %164, %165 : f32
    %167 = arith.mulf %147, %90 : f32
    %168 = arith.addf %166, %167 : f32
    %169 = arith.mulf %148, %82 : f32
    %170 = arith.mulf %149, %85 : f32
    %171 = arith.addf %169, %170 : f32
    %172 = arith.mulf %150, %88 : f32
    %173 = arith.addf %171, %172 : f32
    %174 = arith.mulf %148, %83 : f32
    %175 = arith.mulf %149, %86 : f32
    %176 = arith.addf %174, %175 : f32
    %177 = arith.mulf %150, %89 : f32
    %178 = arith.addf %176, %177 : f32
    %179 = arith.mulf %148, %84 : f32
    %180 = arith.mulf %149, %87 : f32
    %181 = arith.addf %179, %180 : f32
    %182 = arith.mulf %150, %90 : f32
    %183 = arith.addf %181, %182 : f32
    %184 = arith.mulf %151, %82 : f32
    %185 = arith.mulf %152, %85 : f32
    %186 = arith.addf %184, %185 : f32
    %187 = arith.mulf %153, %88 : f32
    %188 = arith.addf %186, %187 : f32
    %189 = arith.mulf %151, %83 : f32
    %190 = arith.mulf %152, %86 : f32
    %191 = arith.addf %189, %190 : f32
    %192 = arith.mulf %153, %89 : f32
    %193 = arith.addf %191, %192 : f32
    %194 = arith.mulf %151, %84 : f32
    %195 = arith.mulf %152, %87 : f32
    %196 = arith.addf %194, %195 : f32
    %197 = arith.mulf %153, %90 : f32
    %198 = arith.addf %196, %197 : f32
    %199 = arith.mulf %145, %118 : f32
    %200 = arith.mulf %146, %121 : f32
    %201 = arith.addf %199, %200 : f32
    %202 = arith.mulf %147, %124 : f32
    %203 = arith.addf %201, %202 : f32
    %204 = arith.mulf %145, %119 : f32
    %205 = arith.mulf %146, %122 : f32
    %206 = arith.addf %204, %205 : f32
    %207 = arith.mulf %147, %125 : f32
    %208 = arith.addf %206, %207 : f32
    %209 = arith.mulf %145, %120 : f32
    %210 = arith.mulf %146, %123 : f32
    %211 = arith.addf %209, %210 : f32
    %212 = arith.mulf %147, %126 : f32
    %213 = arith.addf %211, %212 : f32
    %214 = arith.mulf %148, %118 : f32
    %215 = arith.mulf %149, %121 : f32
    %216 = arith.addf %214, %215 : f32
    %217 = arith.mulf %150, %124 : f32
    %218 = arith.addf %216, %217 : f32
    %219 = arith.mulf %148, %119 : f32
    %220 = arith.mulf %149, %122 : f32
    %221 = arith.addf %219, %220 : f32
    %222 = arith.mulf %150, %125 : f32
    %223 = arith.addf %221, %222 : f32
    %224 = arith.mulf %148, %120 : f32
    %225 = arith.mulf %149, %123 : f32
    %226 = arith.addf %224, %225 : f32
    %227 = arith.mulf %150, %126 : f32
    %228 = arith.addf %226, %227 : f32
    %229 = arith.mulf %151, %118 : f32
    %230 = arith.mulf %152, %121 : f32
    %231 = arith.addf %229, %230 : f32
    %232 = arith.mulf %153, %124 : f32
    %233 = arith.addf %231, %232 : f32
    %234 = arith.mulf %151, %119 : f32
    %235 = arith.mulf %152, %122 : f32
    %236 = arith.addf %234, %235 : f32
    %237 = arith.mulf %153, %125 : f32
    %238 = arith.addf %236, %237 : f32
    %239 = arith.mulf %151, %120 : f32
    %240 = arith.mulf %152, %123 : f32
    %241 = arith.addf %239, %240 : f32
    %242 = arith.mulf %153, %126 : f32
    %243 = arith.addf %241, %242 : f32
    %244 = arith.mulf %203, %91 : f32
    %245 = arith.mulf %208, %94 : f32
    %246 = arith.addf %244, %245 : f32
    %247 = arith.mulf %213, %97 : f32
    %248 = arith.addf %246, %247 : f32
    %249 = arith.mulf %203, %92 : f32
    %250 = arith.mulf %208, %95 : f32
    %251 = arith.addf %249, %250 : f32
    %252 = arith.mulf %213, %98 : f32
    %253 = arith.addf %251, %252 : f32
    %254 = arith.mulf %203, %93 : f32
    %255 = arith.mulf %208, %96 : f32
    %256 = arith.addf %254, %255 : f32
    %257 = arith.mulf %213, %99 : f32
    %258 = arith.addf %256, %257 : f32
    %259 = arith.mulf %218, %91 : f32
    %260 = arith.mulf %223, %94 : f32
    %261 = arith.addf %259, %260 : f32
    %262 = arith.mulf %228, %97 : f32
    %263 = arith.addf %261, %262 : f32
    %264 = arith.mulf %218, %92 : f32
    %265 = arith.mulf %223, %95 : f32
    %266 = arith.addf %264, %265 : f32
    %267 = arith.mulf %228, %98 : f32
    %268 = arith.addf %266, %267 : f32
    %269 = arith.mulf %218, %93 : f32
    %270 = arith.mulf %223, %96 : f32
    %271 = arith.addf %269, %270 : f32
    %272 = arith.mulf %228, %99 : f32
    %273 = arith.addf %271, %272 : f32
    %274 = arith.mulf %233, %91 : f32
    %275 = arith.mulf %238, %94 : f32
    %276 = arith.addf %274, %275 : f32
    %277 = arith.mulf %243, %97 : f32
    %278 = arith.addf %276, %277 : f32
    %279 = arith.mulf %233, %92 : f32
    %280 = arith.mulf %238, %95 : f32
    %281 = arith.addf %279, %280 : f32
    %282 = arith.mulf %243, %98 : f32
    %283 = arith.addf %281, %282 : f32
    %284 = arith.mulf %233, %93 : f32
    %285 = arith.mulf %238, %96 : f32
    %286 = arith.addf %284, %285 : f32
    %287 = arith.mulf %243, %99 : f32
    %288 = arith.addf %286, %287 : f32
    %289 = arith.mulf %203, %127 : f32
    %290 = arith.mulf %208, %130 : f32
    %291 = arith.addf %289, %290 : f32
    %292 = arith.mulf %213, %133 : f32
    %293 = arith.addf %291, %292 : f32
    %294 = arith.mulf %203, %128 : f32
    %295 = arith.mulf %208, %131 : f32
    %296 = arith.addf %294, %295 : f32
    %297 = arith.mulf %213, %134 : f32
    %298 = arith.addf %296, %297 : f32
    %299 = arith.mulf %203, %129 : f32
    %300 = arith.mulf %208, %132 : f32
    %301 = arith.addf %299, %300 : f32
    %302 = arith.mulf %213, %135 : f32
    %303 = arith.addf %301, %302 : f32
    %304 = arith.mulf %218, %127 : f32
    %305 = arith.mulf %223, %130 : f32
    %306 = arith.addf %304, %305 : f32
    %307 = arith.mulf %228, %133 : f32
    %308 = arith.addf %306, %307 : f32
    %309 = arith.mulf %218, %128 : f32
    %310 = arith.mulf %223, %131 : f32
    %311 = arith.addf %309, %310 : f32
    %312 = arith.mulf %228, %134 : f32
    %313 = arith.addf %311, %312 : f32
    %314 = arith.mulf %218, %129 : f32
    %315 = arith.mulf %223, %132 : f32
    %316 = arith.addf %314, %315 : f32
    %317 = arith.mulf %228, %135 : f32
    %318 = arith.addf %316, %317 : f32
    %319 = arith.mulf %233, %127 : f32
    %320 = arith.mulf %238, %130 : f32
    %321 = arith.addf %319, %320 : f32
    %322 = arith.mulf %243, %133 : f32
    %323 = arith.addf %321, %322 : f32
    %324 = arith.mulf %233, %128 : f32
    %325 = arith.mulf %238, %131 : f32
    %326 = arith.addf %324, %325 : f32
    %327 = arith.mulf %243, %134 : f32
    %328 = arith.addf %326, %327 : f32
    %329 = arith.mulf %233, %129 : f32
    %330 = arith.mulf %238, %132 : f32
    %331 = arith.addf %329, %330 : f32
    %332 = arith.mulf %243, %135 : f32
    %333 = arith.addf %331, %332 : f32
    %334 = arith.mulf %293, %100 : f32
    %335 = arith.mulf %298, %103 : f32
    %336 = arith.addf %334, %335 : f32
    %337 = arith.mulf %303, %106 : f32
    %338 = arith.addf %336, %337 : f32
    %339 = arith.mulf %293, %101 : f32
    %340 = arith.mulf %298, %104 : f32
    %341 = arith.addf %339, %340 : f32
    %342 = arith.mulf %303, %107 : f32
    %343 = arith.addf %341, %342 : f32
    %344 = arith.mulf %293, %102 : f32
    %345 = arith.mulf %298, %105 : f32
    %346 = arith.addf %344, %345 : f32
    %347 = arith.mulf %303, %108 : f32
    %348 = arith.addf %346, %347 : f32
    %349 = arith.mulf %308, %100 : f32
    %350 = arith.mulf %313, %103 : f32
    %351 = arith.addf %349, %350 : f32
    %352 = arith.mulf %318, %106 : f32
    %353 = arith.addf %351, %352 : f32
    %354 = arith.mulf %308, %101 : f32
    %355 = arith.mulf %313, %104 : f32
    %356 = arith.addf %354, %355 : f32
    %357 = arith.mulf %318, %107 : f32
    %358 = arith.addf %356, %357 : f32
    %359 = arith.mulf %308, %102 : f32
    %360 = arith.mulf %313, %105 : f32
    %361 = arith.addf %359, %360 : f32
    %362 = arith.mulf %318, %108 : f32
    %363 = arith.addf %361, %362 : f32
    %364 = arith.mulf %323, %100 : f32
    %365 = arith.mulf %328, %103 : f32
    %366 = arith.addf %364, %365 : f32
    %367 = arith.mulf %333, %106 : f32
    %368 = arith.addf %366, %367 : f32
    %369 = arith.mulf %323, %101 : f32
    %370 = arith.mulf %328, %104 : f32
    %371 = arith.addf %369, %370 : f32
    %372 = arith.mulf %333, %107 : f32
    %373 = arith.addf %371, %372 : f32
    %374 = arith.mulf %323, %102 : f32
    %375 = arith.mulf %328, %105 : f32
    %376 = arith.addf %374, %375 : f32
    %377 = arith.mulf %333, %108 : f32
    %378 = arith.addf %376, %377 : f32
    %379 = arith.mulf %293, %136 : f32
    %380 = arith.mulf %298, %139 : f32
    %381 = arith.addf %379, %380 : f32
    %382 = arith.mulf %303, %142 : f32
    %383 = arith.addf %381, %382 : f32
    %384 = arith.mulf %293, %137 : f32
    %385 = arith.mulf %298, %140 : f32
    %386 = arith.addf %384, %385 : f32
    %387 = arith.mulf %303, %143 : f32
    %388 = arith.addf %386, %387 : f32
    %389 = arith.mulf %293, %138 : f32
    %390 = arith.mulf %298, %141 : f32
    %391 = arith.addf %389, %390 : f32
    %392 = arith.mulf %303, %144 : f32
    %393 = arith.addf %391, %392 : f32
    %394 = arith.mulf %308, %136 : f32
    %395 = arith.mulf %313, %139 : f32
    %396 = arith.addf %394, %395 : f32
    %397 = arith.mulf %318, %142 : f32
    %398 = arith.addf %396, %397 : f32
    %399 = arith.mulf %308, %137 : f32
    %400 = arith.mulf %313, %140 : f32
    %401 = arith.addf %399, %400 : f32
    %402 = arith.mulf %318, %143 : f32
    %403 = arith.addf %401, %402 : f32
    %404 = arith.mulf %308, %138 : f32
    %405 = arith.mulf %313, %141 : f32
    %406 = arith.addf %404, %405 : f32
    %407 = arith.mulf %318, %144 : f32
    %408 = arith.addf %406, %407 : f32
    %409 = arith.mulf %323, %136 : f32
    %410 = arith.mulf %328, %139 : f32
    %411 = arith.addf %409, %410 : f32
    %412 = arith.mulf %333, %142 : f32
    %413 = arith.addf %411, %412 : f32
    %414 = arith.mulf %323, %137 : f32
    %415 = arith.mulf %328, %140 : f32
    %416 = arith.addf %414, %415 : f32
    %417 = arith.mulf %333, %143 : f32
    %418 = arith.addf %416, %417 : f32
    %419 = arith.mulf %323, %138 : f32
    %420 = arith.mulf %328, %141 : f32
    %421 = arith.addf %419, %420 : f32
    %422 = arith.mulf %333, %144 : f32
    %423 = arith.addf %421, %422 : f32
    %424 = arith.mulf %383, %109 : f32
    %425 = arith.mulf %388, %112 : f32
    %426 = arith.addf %424, %425 : f32
    %427 = arith.mulf %393, %115 : f32
    %428 = arith.addf %426, %427 : f32
    %429 = arith.mulf %383, %110 : f32
    %430 = arith.mulf %388, %113 : f32
    %431 = arith.addf %429, %430 : f32
    %432 = arith.mulf %393, %116 : f32
    %433 = arith.addf %431, %432 : f32
    %434 = arith.mulf %383, %111 : f32
    %435 = arith.mulf %388, %114 : f32
    %436 = arith.addf %434, %435 : f32
    %437 = arith.mulf %393, %117 : f32
    %438 = arith.addf %436, %437 : f32
    %439 = arith.mulf %398, %109 : f32
    %440 = arith.mulf %403, %112 : f32
    %441 = arith.addf %439, %440 : f32
    %442 = arith.mulf %408, %115 : f32
    %443 = arith.addf %441, %442 : f32
    %444 = arith.mulf %398, %110 : f32
    %445 = arith.mulf %403, %113 : f32
    %446 = arith.addf %444, %445 : f32
    %447 = arith.mulf %408, %116 : f32
    %448 = arith.addf %446, %447 : f32
    %449 = arith.mulf %398, %111 : f32
    %450 = arith.mulf %403, %114 : f32
    %451 = arith.addf %449, %450 : f32
    %452 = arith.mulf %408, %117 : f32
    %453 = arith.addf %451, %452 : f32
    %454 = arith.mulf %413, %109 : f32
    %455 = arith.mulf %418, %112 : f32
    %456 = arith.addf %454, %455 : f32
    %457 = arith.mulf %423, %115 : f32
    %458 = arith.addf %456, %457 : f32
    %459 = arith.mulf %413, %110 : f32
    %460 = arith.mulf %418, %113 : f32
    %461 = arith.addf %459, %460 : f32
    %462 = arith.mulf %423, %116 : f32
    %463 = arith.addf %461, %462 : f32
    %464 = arith.mulf %413, %111 : f32
    %465 = arith.mulf %418, %114 : f32
    %466 = arith.addf %464, %465 : f32
    %467 = arith.mulf %423, %117 : f32
    %468 = arith.addf %466, %467 : f32
    %cst_83 = arith.constant 1.000000e+00 : f32
    %469 = arith.addf %cst_83, %22 : f32
    %cst_84 = arith.constant 0.000000e+00 : f32
    %470 = arith.addf %cst_84, %14 : f32
    %cst_85 = arith.constant 0.000000e+00 : f32
    %471 = arith.addf %cst_85, %6 : f32
    %cst_86 = arith.constant 0.000000e+00 : f32
    %472 = arith.addf %cst_86, %18 : f32
    %cst_87 = arith.constant 1.000000e+00 : f32
    %473 = arith.addf %cst_87, %36 : f32
    %cst_88 = arith.constant 0.000000e+00 : f32
    %474 = arith.addf %cst_88, %10 : f32
    %cst_89 = arith.constant 0.000000e+00 : f32
    %475 = arith.addf %cst_89, %30 : f32
    %cst_90 = arith.constant 0.000000e+00 : f32
    %476 = arith.addf %cst_90, %34 : f32
    %cst_91 = arith.constant 1.000000e+00 : f32
    %477 = arith.addf %cst_91, %26 : f32
    %478 = arith.addf %469, %145 : f32
    %479 = arith.addf %470, %146 : f32
    %480 = arith.addf %471, %147 : f32
    %481 = arith.addf %472, %148 : f32
    %482 = arith.addf %473, %149 : f32
    %483 = arith.addf %474, %150 : f32
    %484 = arith.addf %475, %151 : f32
    %485 = arith.addf %476, %152 : f32
    %486 = arith.addf %477, %153 : f32
    %487 = arith.addf %478, %158 : f32
    %488 = arith.addf %479, %163 : f32
    %489 = arith.addf %480, %168 : f32
    %490 = arith.addf %481, %173 : f32
    %491 = arith.addf %482, %178 : f32
    %492 = arith.addf %483, %183 : f32
    %493 = arith.addf %484, %188 : f32
    %494 = arith.addf %485, %193 : f32
    %495 = arith.addf %486, %198 : f32
    %496 = arith.addf %487, %203 : f32
    %497 = arith.addf %488, %208 : f32
    %498 = arith.addf %489, %213 : f32
    %499 = arith.addf %490, %218 : f32
    %500 = arith.addf %491, %223 : f32
    %501 = arith.addf %492, %228 : f32
    %502 = arith.addf %493, %233 : f32
    %503 = arith.addf %494, %238 : f32
    %504 = arith.addf %495, %243 : f32
    %505 = arith.addf %496, %248 : f32
    %506 = arith.addf %497, %253 : f32
    %507 = arith.addf %498, %258 : f32
    %508 = arith.addf %499, %263 : f32
    %509 = arith.addf %500, %268 : f32
    %510 = arith.addf %501, %273 : f32
    %511 = arith.addf %502, %278 : f32
    %512 = arith.addf %503, %283 : f32
    %513 = arith.addf %504, %288 : f32
    %514 = arith.addf %505, %293 : f32
    %515 = arith.addf %506, %298 : f32
    %516 = arith.addf %507, %303 : f32
    %517 = arith.addf %508, %308 : f32
    %518 = arith.addf %509, %313 : f32
    %519 = arith.addf %510, %318 : f32
    %520 = arith.addf %511, %323 : f32
    %521 = arith.addf %512, %328 : f32
    %522 = arith.addf %513, %333 : f32
    %523 = arith.addf %514, %338 : f32
    %524 = arith.addf %515, %343 : f32
    %525 = arith.addf %516, %348 : f32
    %526 = arith.addf %517, %353 : f32
    %527 = arith.addf %518, %358 : f32
    %528 = arith.addf %519, %363 : f32
    %529 = arith.addf %520, %368 : f32
    %530 = arith.addf %521, %373 : f32
    %531 = arith.addf %522, %378 : f32
    %532 = arith.addf %523, %383 : f32
    %533 = arith.addf %524, %388 : f32
    %534 = arith.addf %525, %393 : f32
    %535 = arith.addf %526, %398 : f32
    %536 = arith.addf %527, %403 : f32
    %537 = arith.addf %528, %408 : f32
    %538 = arith.addf %529, %413 : f32
    %539 = arith.addf %530, %418 : f32
    %540 = arith.addf %531, %423 : f32
    %541 = arith.addf %532, %428 : f32
    %542 = arith.addf %533, %433 : f32
    %543 = arith.addf %534, %438 : f32
    %544 = arith.addf %535, %443 : f32
    %545 = arith.addf %536, %448 : f32
    %546 = arith.addf %537, %453 : f32
    %547 = arith.addf %538, %458 : f32
    %548 = arith.addf %539, %463 : f32
    %549 = arith.addf %540, %468 : f32
    %c0_92 = arith.constant 0 : index
    %550 = memref.load %arg3[%c0_92] : memref<16xf32, #tpu.memory_space<smem>>
    memref.store %541, %arg3[%c0_92] : memref<16xf32, #tpu.memory_space<smem>>
    %c1_93 = arith.constant 1 : index
    %551 = memref.load %arg3[%c1_93] : memref<16xf32, #tpu.memory_space<smem>>
    memref.store %542, %arg3[%c1_93] : memref<16xf32, #tpu.memory_space<smem>>
    %c2_94 = arith.constant 2 : index
    %552 = memref.load %arg3[%c2_94] : memref<16xf32, #tpu.memory_space<smem>>
    memref.store %543, %arg3[%c2_94] : memref<16xf32, #tpu.memory_space<smem>>
    %c3_95 = arith.constant 3 : index
    %553 = memref.load %arg3[%c3_95] : memref<16xf32, #tpu.memory_space<smem>>
    memref.store %544, %arg3[%c3_95] : memref<16xf32, #tpu.memory_space<smem>>
    %c4_96 = arith.constant 4 : index
    %554 = memref.load %arg3[%c4_96] : memref<16xf32, #tpu.memory_space<smem>>
    memref.store %545, %arg3[%c4_96] : memref<16xf32, #tpu.memory_space<smem>>
    %c5_97 = arith.constant 5 : index
    %555 = memref.load %arg3[%c5_97] : memref<16xf32, #tpu.memory_space<smem>>
    memref.store %546, %arg3[%c5_97] : memref<16xf32, #tpu.memory_space<smem>>
    %c6_98 = arith.constant 6 : index
    %556 = memref.load %arg3[%c6_98] : memref<16xf32, #tpu.memory_space<smem>>
    memref.store %547, %arg3[%c6_98] : memref<16xf32, #tpu.memory_space<smem>>
    %c7_99 = arith.constant 7 : index
    %557 = memref.load %arg3[%c7_99] : memref<16xf32, #tpu.memory_space<smem>>
    memref.store %548, %arg3[%c7_99] : memref<16xf32, #tpu.memory_space<smem>>
    %c8 = arith.constant 8 : index
    %558 = memref.load %arg3[%c8] : memref<16xf32, #tpu.memory_space<smem>>
    memref.store %549, %arg3[%c8] : memref<16xf32, #tpu.memory_space<smem>>
    %cst_100 = arith.constant 0.000000e+00 : f32
    %c9 = arith.constant 9 : index
    %559 = memref.load %arg3[%c9] : memref<16xf32, #tpu.memory_space<smem>>
    memref.store %cst_100, %arg3[%c9] : memref<16xf32, #tpu.memory_space<smem>>
    %cst_101 = arith.constant 0.000000e+00 : f32
    %c10 = arith.constant 10 : index
    %560 = memref.load %arg3[%c10] : memref<16xf32, #tpu.memory_space<smem>>
    memref.store %cst_101, %arg3[%c10] : memref<16xf32, #tpu.memory_space<smem>>
    %cst_102 = arith.constant 0.000000e+00 : f32
    %c11 = arith.constant 11 : index
    %561 = memref.load %arg3[%c11] : memref<16xf32, #tpu.memory_space<smem>>
    memref.store %cst_102, %arg3[%c11] : memref<16xf32, #tpu.memory_space<smem>>
    %cst_103 = arith.constant 0.000000e+00 : f32
    %c12 = arith.constant 12 : index
    %562 = memref.load %arg3[%c12] : memref<16xf32, #tpu.memory_space<smem>>
    memref.store %cst_103, %arg3[%c12] : memref<16xf32, #tpu.memory_space<smem>>
    %cst_104 = arith.constant 0.000000e+00 : f32
    %c13 = arith.constant 13 : index
    %563 = memref.load %arg3[%c13] : memref<16xf32, #tpu.memory_space<smem>>
    memref.store %cst_104, %arg3[%c13] : memref<16xf32, #tpu.memory_space<smem>>
    %cst_105 = arith.constant 0.000000e+00 : f32
    %c14 = arith.constant 14 : index
    %564 = memref.load %arg3[%c14] : memref<16xf32, #tpu.memory_space<smem>>
    memref.store %cst_105, %arg3[%c14] : memref<16xf32, #tpu.memory_space<smem>>
    %cst_106 = arith.constant 0.000000e+00 : f32
    %c15 = arith.constant 15 : index
    %565 = memref.load %arg3[%c15] : memref<16xf32, #tpu.memory_space<smem>>
    memref.store %cst_106, %arg3[%c15] : memref<16xf32, #tpu.memory_space<smem>>
    return
  }
}

</mosaic_0001>

<bundles_post_ra>
// kernel: homography_net_forward.1
= control target key start
LH: loop header
LB: loop body
LE: loop exit
PB: predicated region body
PF: predicated region fallthrough
CT: control target
= control target key end

     0   :  { %s1832_s0 = inlined_call_operand.<no memory space> [shape: s32[1], index: 0, kind: input, shape index: {}]   ;;  %s1833_s1 = inlined_call_operand.vmem [shape: f32[8], index: 1, kind: input, shape index: {}]   ;;  %s1834_s2 = inlined_call_operand.vmem [shape: f32[8], index: 2, kind: input, shape index: {}]   ;;  %s1835_s3 = inlined_call_operand.vmem [shape: f32[16], index: 3, kind: output, shape index: {}]  }
   0x1   :  { %2037 = sst [smem:[#allocation88_spill]] %s1835_s3 }
   0x2   :  { %9 = vsyncpa [#allocation4], 0 }
   0x3   :  { %10 = vsyncpa [#allocation7], 0 }
   0x4   :  { %11 = vsyncpa [#allocation5], 0  ;;  %s20_s14 = sshll.u32 %s1833_s1, 4  ;;  %s30_s17 = sshll.u32 %s1834_s2, 4  ;;  %s21_s14 = int_to_ptr.vmem [resolvable:$true] %s20_s14  ;;  %s31_s17 = int_to_ptr.vmem [resolvable:$true] %s30_s17 }
   0x5   :  { %s655_s18 = scalar_lea.vmem %s21_s14, 16  ;;  %p660_p1 = scmp.lt.s32.totalorder %s21_s14, %s21_s14 }
   0x6   :  { %p656_p0 = scmp.ne.s32.totalorder %s21_s14, %s655_s18  ;;  %p661_p2 = scmp.lt.s32.totalorder %s655_s18, %s655_s18 }
   0x8   :  { %p662_p3 = por %p661_p2, %p660_p1 }
   0xa   :  { %p663_p4 = pnand %p662_p3, %p656_p0 }
   0xc   :  { %666 = shalt.err (!%p663_p4)
}
   0xd   :  { %s697_s19 = smov [#allocation3]   ;;  %s667_s20 = scalar_lea.vmem %s31_s17, 16 }
   0xe   :  { %23 = dma.vmem_to_smem %s21_s14, 16, %s697_s19, [#allocation4]  }
   0xf   :  { %p668_p5 = scmp.ne.s32.totalorder %s31_s17, %s667_s20  ;;  %p672_p6 = scmp.lt.s32.totalorder %s31_s17, %s31_s17 }
  0x10   :  { %p673_p7 = scmp.lt.s32.totalorder %s667_s20, %s667_s20 }
  0x12   :  { %p674_p8 = por %p673_p7, %p672_p6 }
  0x14   :  { %p675_p9 = pnand %p674_p8, %p668_p5 }
  0x16   :  { %678 = shalt.err (!%p675_p9)
}
  0x17   :  { %s698_s1 = smov [#allocation6]  }
  0x18   :  { %33 = dma.vmem_to_smem %s31_s17, 16, %s698_s1, [#allocation7]  }
  0x19   :  { %691 = dma.done.wait [#allocation4], 16  }
  0x1a   :  { %692 = vsyncadd [#allocation4], 4294967280 }
  0x1b   :  { %693 = dma.done.wait [#allocation7], 16  }
  0x1c   :  { %694 = vsyncadd [#allocation7], 4294967280 }
  0x1d   :  { %40 = sfence }
  0x1e   :  { %p42_p10 = scmp.eq.s32.totalorder %s1832_s0, 0  ;;  %s44_s22 = sld [smem:[#allocation6]] }
  0x1f   :  { %s45_s23 = sld [smem:[#allocation3]] }
  0x20   :  { %s730_s24 = scalar_select %p42_p10, 1.0, 0.0 }
  0x21   :  { %s637_s25 = sld [smem:[#allocation6 + $0x1]] }
  0x22   :  { %s638_s26 = sld [smem:[#allocation3 + $0x1]] }
  0x23   :  { %s639_s27 = sld [smem:[#allocation6 + $0x2]] }
  0x24   :  { %s640_s28 = sld [smem:[#allocation3 + $0x2]] }
  0x25   :  { %s46_s29 = smul.f32 %s45_s23, %s730_s24  ;;  %s641_s30 = sld [smem:[#allocation6 + $0x3]] }
  0x26   :  { %s642_s4 = sld [smem:[#allocation3 + $0x3]] }
  0x27   :  { %s733_s5 = sadd.f32 %s46_s29, %s44_s22 }
  0x28   :  { %s50_s0 = smul.f32 %s638_s26, %s730_s24  ;;  %s643_s6 = sld [smem:[#allocation6 + $0x4]] }
  0x29   :  { %2038 = sst [smem:[#allocation12_spill]] %s733_s5  ;;  %s737_s8 = smul.f32 0.33333334, %s733_s5 }
  0x2a   :  { %s644_s7 = sld [smem:[#allocation3 + $0x4]]  ;;  %s54_s10 = smul.f32 %s640_s28, %s730_s24 }
  0x2b   :  { %2039 = sst [smem:[#allocation13_spill]] %s737_s8  ;;  %s743_s12 = smul.f32 0.2, %s733_s5 }
  0x2c   :  { %s739_s9 = sadd.f32 %s637_s25, %s50_s0  ;;  %s58_s14 = smul.f32 %s642_s4, %s730_s24 }
  0x2d   :  { %s645_s11 = sld [smem:[#allocation6 + $0x5]] }
  0x2e   :  { %2040 = sst [smem:[#allocation14_spill]] %s739_s9  ;;  %s749_s16 = smul.f32 0.33333334, %s739_s9 }
  0x2f   :  { %2041 = sst [smem:[#allocation15_spill]] %s743_s12  ;;  %s875_s12 = smul.f32 0.14285715, %s733_s5 }
  0x30   :  { %s745_s13 = sadd.f32 %s639_s27, %s54_s10  ;;  %s62_s19 = smul.f32 %s644_s7, %s730_s24 }
  0x31   :  { %s646_s15 = sld [smem:[#allocation3 + $0x5]] }
  0x32   :  { %2042 = sst [smem:[#allocation16_spill]] %s745_s13  ;;  %s765_s25 = smul.f32 0.33333334, %s745_s13 }
  0x33   :  { %2043 = sst [smem:[#allocation17_spill]] %s749_s16 }
  0x34   :  { %s751_s17 = sadd.f32 %s641_s30, %s58_s14  ;;  %s857_s30 = smul.f32 0.2, %s739_s9 }
  0x35   :  { %s647_s20 = sld [smem:[#allocation6 + $0x6]] }
  0x36   :  { %2044 = sst [smem:[#allocation18_spill]] %s751_s17  ;;  %s758_s2 = smul.f32 %s751_s17, %s745_s13 }
  0x37   :  { %s648_s1 = sld [smem:[#allocation3 + $0x6]]  ;;  %s66_s26 = smul.f32 %s646_s15, %s730_s24 }
  0x38   :  { %s760_s21 = sadd.f32 %s643_s6, %s62_s19 }
  0x39   :  { %s649_s23 = sld [smem:[#allocation6 + $0x7]] }
  0x3a   :  { %2045 = sst [smem:[#allocation19_spill]] %s760_s21  ;;  %s869_s3 = smul.f32 0.14285715, %s760_s21 }
  0x3b   :  { %2046 = sst [smem:[#allocation20_spill]] %s765_s25 }
  0x3c   :  { %s650_s27 = sld [smem:[#allocation3 + $0x7]] }
  0x3d   :  { %s770_s29 = sadd.f32 %s645_s11, %s66_s26  ;;  %s70_s4 = smul.f32 %s648_s1, %s730_s24 }
  0x3e   :  { %s848_s26 = smul.f32 0.2, %s745_s13  ;;  %2058 = sst [smem:[#allocation32_spill]] %s857_s30 }
  0x3f   :  { %2047 = sst [smem:[#allocation21_spill]] %s770_s29  ;;  %s842_s10 = smul.f32 0.33333334, %s770_s29 }
  0x40   :  { %s76_s0 = sadd.f32 %s770_s29, %s760_s21  ;;  %s866_s28 = smul.f32 0.2, %s770_s29 }
  0x41   :  { %s779_s7 = sadd.f32 %s647_s20, %s70_s4  ;;  %s827_s20 = smul.f32 0.33333334, %s760_s21 }
  0x42   :  { %s74_s11 = smul.f32 %s650_s27, %s730_s24  ;;  %s784_s14 = ssub.f32 0.0, %s76_s0 }
  0x43   :  { %2048 = sst [smem:[#allocation22_spill]] %s779_s7  ;;  %s788_s15 = smul.f32 %s779_s7, %s733_s5 }
  0x44   :  { %2049 = sst [smem:[#allocation23_spill]] %s784_s14  ;;  %s833_s22 = smul.f32 0.33333334, %s784_s14 }
  0x45   :  { %s790_s19 = sadd.f32 %s649_s23, %s74_s11  ;;  %s830_s11 = smul.f32 0.33333334, %s751_s17 }
  0x46   :  { %2051 = sst [smem:[#allocation25_spill]] %s833_s22  ;;  %s836_s1 = smul.f32 0.33333334, %s779_s7 }
  0x47   :  { %2050 = sst [smem:[#allocation24_spill]] %s790_s19  ;;  %s806_s23 = smul.f32 %s790_s19, %s739_s9 }
  0x48   :  { %s839_s27 = smul.f32 0.33333334, %s790_s19  ;;  %2053 = sst [smem:[#allocation27_spill]] %s842_s10 }
  0x49   :  { %s845_s4 = smul.f32 0.2, %s760_s21  ;;  %2055 = sst [smem:[#allocation29_spill]] %s848_s26 }
  0x4a   :  { %2052 = sst [smem:[#allocation26_spill]] %s839_s27  ;;  %s851_s24 = smul.f32 0.2, %s751_s17 }
  0x4b   :  { %2054 = sst [smem:[#allocation28_spill]] %s845_s4  ;;  %s854_s0 = smul.f32 0.2, %s784_s14 }
  0x4c   :  { %2056 = sst [smem:[#allocation30_spill]] %s851_s24  ;;  %s860_s18 = smul.f32 0.2, %s779_s7 }
  0x4d   :  { %2057 = sst [smem:[#allocation31_spill]] %s854_s0  ;;  %s863_s6 = smul.f32 0.2, %s790_s19 }
  0x4e   :  { %2059 = sst [smem:[#allocation33_spill]] %s860_s18  ;;  %s872_s30 = smul.f32 0.14285715, %s745_s13 }
  0x4f   :  { %2060 = sst [smem:[#allocation34_spill]] %s863_s6  ;;  %s878_s0 = smul.f32 0.14285715, %s751_s17 }
  0x50   :  { %2061 = sst [smem:[#allocation35_spill]] %s866_s28  ;;  %s2066_s6 = smul.f32 %s760_s21, %s760_s21 }
  0x51   :  { %2062 = sst [smem:[#allocation36_spill]] %s869_s3  ;;  %s885_s28 = smul.f32 0.14285715, %s784_s14 }
  0x52   :  { %2063 = sst [smem:[#allocation37_spill]] %s872_s30  ;;  %s888_s3 = smul.f32 0.14285715, %s739_s9 }
  0x53   :  { %2064 = sst [smem:[#allocation38_spill]] %s875_s12  ;;  %s2069_s18 = smul.f32 %s760_s21, %s733_s5 }
  0x54   :  { %2065 = sst [smem:[#allocation39_spill]] %s878_s0  ;;  %s2070_s24 = smul.f32 %s745_s13, %s739_s9 }
  0x55   :  { %s80_s26 = sadd.f32 %s758_s2, %s2066_s6  ;;  %s897_s12 = smul.f32 0.14285715, %s779_s7 }
  0x56   :  { %2067 = sst [smem:[#allocation40_spill]] %s885_s28  ;;  %s900_s30 = smul.f32 0.14285715, %s790_s19 }
  0x57   :  { %2068 = sst [smem:[#allocation41_spill]] %s888_s3  ;;  %s906_s28 = smul.f32 0.14285715, %s770_s29 }
  0x58   :  { %s90_s4 = sadd.f32 %s2070_s24, %s2069_s18  ;;  %s2074_s3 = smul.f32 %s760_s21, %s745_s13 }
  0x59   :  { %2071 = sst [smem:[#allocation42_spill]] %s897_s12  ;;  %s2075_s0 = smul.f32 %s784_s14, %s745_s13 }
  0x5a   :  { %2072 = sst [smem:[#allocation43_spill]] %s900_s30  ;;  %s915_s18 = smul.f32 0.11111111, %s760_s21 }
  0x5b   :  { %s903_s6 = sadd.f32 %s788_s15, %s80_s26  ;;  %s2077_s24 = smul.f32 %s770_s29, %s733_s5 }
  0x5c   :  { %2073 = sst [smem:[#allocation44_spill]] %s906_s28  ;;  %s923_s26 = smul.f32 0.11111111, %s745_s13 }
  0x5d   :  { %s85_s10 = sadd.f32 %s2075_s0, %s2074_s3  ;;  %s2079_s30 = smul.f32 %s760_s21, %s751_s17 }
  0x5e   :  { %2076 = sst [smem:[#allocation45_spill]] %s915_s18  ;;  %s2080_s28 = smul.f32 %s784_s14, %s751_s17 }
  0x5f   :  { %s920_s12 = sadd.f32 %s2077_s24, %s90_s4  ;;  %s932_s3 = smul.f32 0.11111111, %s733_s5 }
  0x60   :  { %2078 = sst [smem:[#allocation46_spill]] %s923_s26  ;;  %s2082_s0 = smul.f32 %s784_s14, %s784_s14 }
  0x61   :  { %s95_s16 = sadd.f32 %s2080_s28, %s2079_s30  ;;  %s939_s4 = smul.f32 0.11111111, %s751_s17 }
  0x62   :  { %2081 = sst [smem:[#allocation47_spill]] %s932_s3  ;;  %s2084_s24 = smul.f32 %s751_s17, %s733_s5 }
  0x63   :  { %s99_s18 = sadd.f32 %s2082_s0, %s758_s2  ;;  %s2085_s8 = smul.f32 %s784_s14, %s739_s9 }
  0x64   :  { %2083 = sst [smem:[#allocation48_spill]] %s939_s4  ;;  %s948_s28 = smul.f32 0.11111111, %s784_s14 }
  0x65   :  { %s104_s27 = sadd.f32 %s2085_s8, %s2084_s24  ;;  %s2087_s30 = smul.f32 %s790_s19, %s733_s5 }
  0x66   :  { %2086 = sst [smem:[#allocation49_spill]] %s948_s28  ;;  %s956_s2 = smul.f32 0.11111111, %s739_s9 }
  0x67   :  { %s953_s26 = sadd.f32 %s2087_s30, %s85_s10  ;;  %s2089_s0 = smul.f32 %s779_s7, %s739_s9 }
  0x68   :  { %2088 = sst [smem:[#allocation50_spill]] %s956_s2  ;;  %s964_s8 = smul.f32 0.11111111, %s779_s7 }
  0x69   :  { %s961_s3 = sadd.f32 %s2089_s0, %s95_s16  ;;  %s970_s28 = smul.f32 0.11111111, %s790_s19 }
  0x6a   :  { %2090 = sst [smem:[#allocation51_spill]] %s964_s8  ;;  %s2092_s10 = smul.f32 %s770_s29, %s739_s9 }
  0x6b   :  { %s967_s24 = sadd.f32 %s806_s23, %s99_s18  ;;  %s978_s2 = smul.f32 0.11111111, %s770_s29 }
  0x6c   :  { %2091 = sst [smem:[#allocation52_spill]] %s970_s28  ;;  %s2094_s4 = smul.f32 %s779_s7, %s760_s21 }
  0x6d   :  { %s975_s30 = sadd.f32 %s2092_s10, %s104_s27  ;;  %s2095_s5 = smul.f32 %s790_s19, %s751_s17 }
  0x6e   :  { %2093 = sst [smem:[#allocation53_spill]] %s978_s2  ;;  %s987_s0 = smul.f32 0.083333336, %s903_s6 }
  0x6f   :  { %s109_s16 = sadd.f32 %s2095_s5, %s2094_s4  ;;  %s2097_s8 = smul.f32 %s779_s7, %s745_s13 }
  0x70   :  { %2096 = sst [smem:[#allocation54_spill]] %s987_s0  ;;  %s2098_s22 = smul.f32 %s784_s14, %s790_s19 }
  0x71   :  { %s996_s25 = smul.f32 0.083333336, %s953_s26  ;;  %s117_s27 = sadd.f32 %s806_s23, %s788_s15 }
  0x72   :  { %s114_s18 = sadd.f32 %s2098_s22, %s2097_s8  ;;  %s1001_s10 = smul.f32 0.083333336, %s920_s12 }
  0x73   :  { %2099 = sst [smem:[#allocation55_spill]] %s996_s25  ;;  %s1004_s2 = smul.f32 0.083333336, %s961_s3 }
  0x74   :  { %2100 = sst [smem:[#allocation56_spill]] %s1001_s10  ;;  %s2102_s28 = smul.f32 %s779_s7, %s770_s29 }
  0x75   :  { %2101 = sst [smem:[#allocation57_spill]] %s1004_s2  ;;  %s1012_s5 = smul.f32 0.083333336, %s967_s24 }
  0x76   :  { %s1009_s9 = sadd.f32 %s2102_s28, %s109_s16  ;;  %s2104_s4 = smul.f32 %s790_s19, %s770_s29 }
  0x77   :  { %2103 = sst [smem:[#allocation58_spill]] %s1012_s5  ;;  %s1020_s15 = smul.f32 0.083333336, %s975_s30 }
  0x78   :  { %s1017_s22 = sadd.f32 %s2104_s4, %s114_s18  ;;  %s2106_s23 = smul.f32 %s770_s29, %s770_s29 }
  0x79   :  { %2105 = sst [smem:[#allocation59_spill]] %s1020_s15  ;;  %s1028_s28 = smul.f32 0.083333336, %s1009_s9 }
  0x7a   :  { %s1025_s8 = sadd.f32 %s2106_s23, %s117_s27  ;;  %s1031_s16 = smul.f32 0.083333336, %s1017_s22 }
  0x7b   :  { %2107 = sst [smem:[#allocation60_spill]] %s1028_s28  ;;  %s1037_s4 = smul.f32 0.033333335, %s903_s6 }
  0x7c   :  { %2108 = sst [smem:[#allocation61_spill]] %s1031_s16  ;;  %s1034_s18 = smul.f32 0.083333336, %s1025_s8 }
  0x7d   :  { %2110 = sst [smem:[#allocation63_spill]] %s1037_s4  ;;  %s1040_s19 = smul.f32 0.033333335, %s953_s26 }
  0x7e   :  { %2109 = sst [smem:[#allocation62_spill]] %s1034_s18  ;;  %s1043_s27 = smul.f32 0.033333335, %s920_s12 }
  0x7f   :  { %2111 = sst [smem:[#allocation64_spill]] %s1040_s19  ;;  %s1046_s23 = smul.f32 0.033333335, %s961_s3 }
  0x80   :  { %2112 = sst [smem:[#allocation65_spill]] %s1043_s27  ;;  %s1049_s7 = smul.f32 0.033333335, %s967_s24 }
  0x81   :  { %2113 = sst [smem:[#allocation66_spill]] %s1046_s23  ;;  %s1052_s17 = smul.f32 0.033333335, %s975_s30 }
  0x82   :  { %2114 = sst [smem:[#allocation67_spill]] %s1049_s7  ;;  %s1055_s13 = smul.f32 0.033333335, %s1009_s9 }
  0x83   :  { %2115 = sst [smem:[#allocation68_spill]] %s1052_s17  ;;  %s1058_s4 = smul.f32 0.033333335, %s1017_s22 }
  0x84   :  { %2116 = sst [smem:[#allocation69_spill]] %s1055_s13  ;;  %s1061_s19 = smul.f32 0.033333335, %s1025_s8 }
  0x85   :  { %2117 = sst [smem:[#allocation70_spill]] %s1058_s4  ;;  %s1064_s27 = smul.f32 0.017857144, %s903_s6 }
  0x86   :  { %2118 = sst [smem:[#allocation71_spill]] %s1061_s19  ;;  %s1067_s23 = smul.f32 0.017857144, %s953_s26 }
  0x87   :  { %2119 = sst [smem:[#allocation72_spill]] %s1064_s27  ;;  %s1070_s7 = smul.f32 0.017857144, %s920_s12 }
  0x88   :  { %2120 = sst [smem:[#allocation73_spill]] %s1067_s23  ;;  %s1073_s17 = smul.f32 0.017857144, %s961_s3 }
  0x89   :  { %2121 = sst [smem:[#allocation74_spill]] %s1070_s7  ;;  %s1076_s13 = smul.f32 0.017857144, %s967_s24 }
  0x8a   :  { %2122 = sst [smem:[#allocation75_spill]] %s1073_s17  ;;  %s1079_s4 = smul.f32 0.017857144, %s975_s30 }
  0x8b   :  { %2123 = sst [smem:[#allocation76_spill]] %s1076_s13  ;;  %s1082_s19 = smul.f32 0.017857144, %s1009_s9 }
  0x8c   :  { %2124 = sst [smem:[#allocation77_spill]] %s1079_s4  ;;  %s1085_s27 = smul.f32 0.017857144, %s1017_s22 }
  0x8d   :  { %s2125_s29 = sld [smem:[#allocation20_spill]]  ;;  %s1088_s23 = smul.f32 0.017857144, %s1025_s8 }
  0x8e   :  { %2126 = sst [smem:[#allocation20_spill]] %s1082_s19  ;;  %s1091_s7 = smul.f32 0.5, %s903_s6 }
  0x8f   :  { %s2127_s14 = sld [smem:[#allocation25_spill]]  ;;  %s1094_s13 = smul.f32 0.5, %s953_s26 }
  0x90   :  { %2128 = sst [smem:[#allocation25_spill]] %s1085_s27  ;;  %s1097_s19 = smul.f32 0.5, %s920_s12 }
  0x91   :  { %s2129_s21 = sld [smem:[#allocation26_spill]]  ;;  %s1103_s6 = smul.f32 0.5, %s967_s24 }
  0x92   :  { %2130 = sst [smem:[#allocation78_spill]] %s1088_s23  ;;  %s1100_s23 = smul.f32 0.5, %s961_s3 }
  0x93   :  { %s2131_s18 = sld [smem:[#allocation13_spill]]  ;;  %s1106_s26 = smul.f32 0.5, %s975_s30 }
  0x94   :  { %2132 = sst [smem:[#allocation79_spill]] %s1091_s7  ;;  %s1109_s27 = smul.f32 0.5, %s1009_s9 }
  0x95   :  { %s2133_s17 = sld [smem:[#allocation17_spill]]  ;;  %s1112_s12 = smul.f32 0.5, %s1017_s22 }
  0x96   :  { %2134 = sst [smem:[#allocation80_spill]] %s1094_s13  ;;  %s1115_s15 = smul.f32 0.5, %s1025_s8 }
  0x97   :  { %s2135_s4 = sld [smem:[#allocation27_spill]]  ;;  %s192_s3 = smul.f32 %s1091_s7, %s827_s20 }
  0x98   :  { %2136 = sst [smem:[#allocation81_spill]] %s1097_s19  ;;  %s193_s24 = smul.f32 %s1094_s13, %s830_s11 }
  0x99   :  { %2137 = sst [smem:[#allocation82_spill]] %s1100_s23  ;;  %s195_s10 = smul.f32 %s1097_s19, %s836_s1 }
  0x9a   :  { %2138 = sst [smem:[#allocation83_spill]] %s1103_s6  ;;  %s197_s30 = smul.f32 %s1091_s7, %s2125_s29 }
  0x9b   :  { %2139 = sst [smem:[#allocation84_spill]] %s1106_s26  ;;  %s198_s16 = smul.f32 %s1094_s13, %s2127_s14 }
  0x9c   :  { %2140 = sst [smem:[#allocation85_spill]] %s1109_s27  ;;  %s200_s5 = smul.f32 %s1097_s19, %s2129_s21 }
  0x9d   :  { %2141 = sst [smem:[#allocation86_spill]] %s1112_s12  ;;  %s202_s9 = smul.f32 %s1091_s7, %s2131_s18 }
  0x9e   :  { %2142 = sst [smem:[#allocation87_spill]] %s1115_s15  ;;  %s203_s22 = smul.f32 %s1094_s13, %s2133_s17 }
  0x9f   :  { %s205_s25 = smul.f32 %s1097_s19, %s2135_s4 }
  0xa0   :  { %s207_s8 = smul.f32 %s1100_s23, %s827_s20 }
  0xa1   :  { %s208_s28 = smul.f32 %s1103_s6, %s830_s11 }
  0xa2   :  { %s210_s2 = smul.f32 %s1106_s26, %s836_s1 }
  0xa3   :  { %s212_s0 = smul.f32 %s1100_s23, %s2125_s29 }
  0xa4   :  { %s213_s7 = smul.f32 %s1103_s6, %s2127_s14 }
  0xa5   :  { %s215_s13 = smul.f32 %s1106_s26, %s2129_s21  ;;  %s194_s21 = sadd.f32 %s193_s24, %s192_s3 }
  0xa6   :  { %s217_s19 = smul.f32 %s1100_s23, %s2131_s18  ;;  %s2143_s23 = sld [smem:[#allocation26_spill]] }
  0xa7   :  { %s218_s18 = smul.f32 %s1103_s6, %s2133_s17  ;;  %s199_s24 = sadd.f32 %s198_s16, %s197_s30 }
  0xa8   :  { %s220_s3 = smul.f32 %s1106_s26, %s2135_s4  ;;  %s2144_s6 = sld [smem:[#allocation13_spill]] }
  0xa9   :  { %s222_s17 = smul.f32 %s1109_s27, %s827_s20  ;;  %s2145_s26 = sld [smem:[#allocation17_spill]] }
  0xaa   :  { %s223_s4 = smul.f32 %s1112_s12, %s830_s11  ;;  %s1157_s16 = sadd.f32 %s195_s10, %s194_s21 }
  0xab   :  { %s225_s30 = smul.f32 %s1115_s15, %s836_s1  ;;  %s2147_s20 = sld [smem:[#allocation27_spill]] }
  0xac   :  { %2146 = sst [smem:[#allocation26_spill]] %s1157_s16  ;;  %s227_s21 = smul.f32 %s1109_s27, %s2125_s29 }
  0xad   :  { %s204_s11 = sadd.f32 %s203_s22, %s202_s9  ;;  %s228_s22 = smul.f32 %s1112_s12, %s2127_s14 }
  0xae   :  { %s2148_s10 = sld [smem:[#allocation54_spill]]  ;;  %s230_s14 = smul.f32 %s1115_s15, %s2143_s23 }
  0xaf   :  { %s2149_s16 = sld [smem:[#allocation79_spill]]  ;;  %s232_s23 = smul.f32 %s1109_s27, %s2144_s6 }
  0xb0   :  { %s1163_s1 = sadd.f32 %s200_s5, %s199_s24  ;;  %s233_s6 = smul.f32 %s1112_s12, %s2145_s26 }
  0xb1   :  { %s2151_s9 = sld [smem:[#allocation57_spill]] }
  0xb2   :  { %2150 = sst [smem:[#allocation13_spill]] %s1163_s1 }
  0xb3   :  { %s2152_s29 = sld [smem:[#allocation80_spill]] }
  0xb4   :  { %s2153_s5 = sld [smem:[#allocation60_spill]] }
  0xb5   :  { %s209_s24 = sadd.f32 %s208_s28, %s207_s8 }
  0xb6   :  { %s2154_s1 = sld [smem:[#allocation81_spill]] }
  0xb7   :  { %s2155_s8 = sld [smem:[#allocation55_spill]] }
  0xb8   :  { %s214_s28 = sadd.f32 %s213_s7, %s212_s0 }
  0xb9   :  { %s2156_s0 = sld [smem:[#allocation58_spill]] }
  0xba   :  { %s1171_s7 = sadd.f32 %s205_s25, %s204_s11 }
  0xbb   :  { %s2158_s27 = sld [smem:[#allocation61_spill]] }
  0xbc   :  { %2157 = sst [smem:[#allocation17_spill]] %s1171_s7  ;;  %s235_s7 = smul.f32 %s1115_s15, %s2147_s20 }
  0xbd   :  { %s219_s11 = sadd.f32 %s218_s18, %s217_s19  ;;  %s237_s18 = smul.f32 %s2149_s16, %s2148_s10 }
  0xbe   :  { %s2159_s25 = sld [smem:[#allocation56_spill]]  ;;  %s238_s20 = smul.f32 %s2152_s29, %s2151_s9 }
  0xbf   :  { %s1177_s12 = sadd.f32 %s210_s2, %s209_s24 }
  0xc0   :  { %s2161_s26 = sld [smem:[#allocation59_spill]] }
  0xc1   :  { %2160 = sst [smem:[#allocation27_spill]] %s1177_s12  ;;  %s240_s12 = smul.f32 %s2154_s1, %s2153_s5 }
  0xc2   :  { %s2162_s19 = sld [smem:[#allocation62_spill]] }
  0xc3   :  { %s1181_s15 = sadd.f32 %s215_s13, %s214_s28 }
  0xc4   :  { %s2164_s2 = sld [smem:[#allocation82_spill]] }
  0xc5   :  { %2163 = sst [smem:[#allocation54_spill]] %s1181_s15  ;;  %s242_s15 = smul.f32 %s2149_s16, %s2155_s8 }
  0xc6   :  { %s224_s24 = sadd.f32 %s223_s4, %s222_s17 }
  0xc7   :  { %s2165_s13 = sld [smem:[#allocation83_spill]] }
  0xc8   :  { %s1187_s28 = sadd.f32 %s220_s3, %s219_s11  ;;  %s243_s3 = smul.f32 %s2152_s29, %s2156_s0 }
  0xc9   :  { %s2167_s4 = sld [smem:[#allocation84_spill]] }
  0xca   :  { %2166 = sst [smem:[#allocation57_spill]] %s1187_s28  ;;  %s245_s28 = smul.f32 %s2154_s1, %s2158_s27 }
  0xcb   :  { %s229_s17 = sadd.f32 %s228_s22, %s227_s21  ;;  %s247_s22 = smul.f32 %s2149_s16, %s2159_s25 }
  0xcc   :  { %s234_s11 = sadd.f32 %s233_s6, %s232_s23  ;;  %s248_s23 = smul.f32 %s2152_s29, %s2161_s26 }
  0xcd   :  { %s1195_s21 = sadd.f32 %s225_s30, %s224_s24  ;;  %s250_s30 = smul.f32 %s2154_s1, %s2162_s19 }
  0xce   :  { %s239_s6 = sadd.f32 %s238_s20, %s237_s18  ;;  %s252_s16 = smul.f32 %s2164_s2, %s2148_s10 }
  0xcf   :  { %2168 = sst [smem:[#allocation60_spill]] %s1195_s21  ;;  %s253_s20 = smul.f32 %s2165_s13, %s2151_s9 }
  0xd0   :  { %s1201_s24 = sadd.f32 %s230_s14, %s229_s17  ;;  %s255_s17 = smul.f32 %s2167_s4, %s2153_s5 }
  0xd1   :  { %s1205_s21 = sadd.f32 %s235_s7, %s234_s11  ;;  %s257_s7 = smul.f32 %s2164_s2, %s2155_s8 }
  0xd2   :  { %2169 = sst [smem:[#allocation55_spill]] %s1201_s24 }
  0xd3   :  { %2170 = sst [smem:[#allocation58_spill]] %s1205_s21 }
  0xd4   :  { %s244_s18 = sadd.f32 %s243_s3, %s242_s15  ;;  %s258_s3 = smul.f32 %s2165_s13, %s2156_s0 }
  0xd5   :  { %s2171_s29 = sld [smem:[#allocation85_spill]] }
  0xd6   :  { %s1211_s14 = sadd.f32 %s240_s12, %s239_s6  ;;  %s260_s6 = smul.f32 %s2167_s4, %s2158_s27 }
  0xd7   :  { %s2173_s24 = sld [smem:[#allocation86_spill]] }
  0xd8   :  { %2172 = sst [smem:[#allocation61_spill]] %s1211_s14 }
  0xd9   :  { %s249_s1 = sadd.f32 %s248_s23, %s247_s22  ;;  %s262_s22 = smul.f32 %s2164_s2, %s2159_s25 }
  0xda   :  { %s2174_s11 = sld [smem:[#allocation87_spill]] }
  0xdb   :  { %s254_s21 = sadd.f32 %s253_s20, %s252_s16  ;;  %s263_s16 = smul.f32 %s2165_s13, %s2161_s26 }
  0xdc   :  { %s1219_s15 = sadd.f32 %s245_s28, %s244_s18  ;;  %s265_s18 = smul.f32 %s2167_s4, %s2162_s19 }
  0xdd   :  { %s2176_s12 = sld [smem:[#allocation19_spill]]  ;;  %s268_s2 = smul.f32 %s2173_s24, %s2151_s9 }
  0xde   :  { %2175 = sst [smem:[#allocation56_spill]] %s1219_s15 }
  0xdf   :  { %s259_s14 = sadd.f32 %s258_s3, %s257_s7  ;;  %s267_s3 = smul.f32 %s2171_s29, %s2148_s10 }
  0xe0   :  { %s1225_s23 = sadd.f32 %s250_s30, %s249_s1 }
  0xe1   :  { %s1229_s20 = sadd.f32 %s255_s17, %s254_s21  ;;  %s270_s21 = smul.f32 %s2174_s11, %s2153_s5 }
  0xe2   :  { %2177 = sst [smem:[#allocation59_spill]] %s1225_s23 }
  0xe3   :  { %2178 = sst [smem:[#allocation62_spill]] %s1229_s20 }
  0xe4   :  { %s264_s15 = sadd.f32 %s263_s16, %s262_s22  ;;  %s272_s16 = smul.f32 %s2171_s29, %s2155_s8 }
  0xe5   :  { %s1235_s7 = sadd.f32 %s260_s6, %s259_s14  ;;  %s273_s6 = smul.f32 %s2173_s24, %s2156_s0 }
  0xe6   :  { %s2181_s1 = sld [smem:[#allocation28_spill]]  ;;  %s278_s8 = smul.f32 %s2173_s24, %s2161_s26 }
  0xe7   :  { %2180 = sst [smem:[#allocation19_spill]] %s1235_s7 }
  0xe8   :  { %s2182_s30 = sld [smem:[#allocation61_spill]] }
  0xe9   :  { %s1239_s23 = sadd.f32 %s265_s18, %s264_s15  ;;  %s275_s18 = smul.f32 %s2174_s11, %s2158_s27 }
  0xea   :  { %s2184_s13 = sld [smem:[#allocation30_spill]] }
  0xeb   :  { %2183 = sst [smem:[#allocation28_spill]] %s1239_s23 }
  0xec   :  { %s2185_s17 = sld [smem:[#allocation56_spill]] }
  0xed   :  { %s269_s4 = sadd.f32 %s268_s2, %s267_s3  ;;  %s277_s2 = smul.f32 %s2171_s29, %s2159_s25 }
  0xee   :  { %s2187_s22 = sld [smem:[#allocation33_spill]]  ;;  %s282_s25 = smul.f32 %s2182_s30, %s2181_s1 }
  0xef   :  { %s2188_s10 = sld [smem:[#allocation59_spill]] }
  0xf0   :  { %s507_s14 = sadd.f32 1.0, %s2176_s12 }
  0xf1   :  { %s2189_s7 = sld [smem:[#allocation29_spill]] }
  0xf2   :  { %s1248_s9 = sadd.f32 %s270_s21, %s269_s4  ;;  %s283_s24 = smul.f32 %s2185_s17, %s2184_s13 }
  0xf3   :  { %s2191_s15 = sld [smem:[#allocation31_spill]] }
  0xf4   :  { %2190 = sst [smem:[#allocation30_spill]] %s1248_s9  ;;  %s280_s9 = smul.f32 %s2174_s11, %s2162_s19 }
  0xf5   :  { %s2192_s23 = sld [smem:[#allocation79_spill]] }
  0xf6   :  { %s274_s5 = sadd.f32 %s273_s6, %s272_s16 }
  0xf7   :  { %s2193_s3 = sld [smem:[#allocation34_spill]] }
  0xf8   :  { %s2194_s12 = sld [smem:[#allocation15_spill]] }
  0xf9   :  { %s1257_s4 = sadd.f32 %s275_s18, %s274_s5  ;;  %s285_s18 = smul.f32 %s2188_s10, %s2187_s22 }
  0xfa   :  { %s2196_s21 = sld [smem:[#allocation32_spill]]  ;;  %s288_s20 = smul.f32 %s2185_s17, %s2191_s15 }
  0xfb   :  { %2195 = sst [smem:[#allocation33_spill]] %s1257_s4 }
  0xfc   :  { %s279_s16 = sadd.f32 %s278_s8, %s277_s2  ;;  %s287_s2 = smul.f32 %s2182_s30, %s2189_s7 }
  0xfd   :  { %s2199_s29 = sld [smem:[#allocation35_spill]] }
  0xfe   :  { %s2200_s0 = sld [smem:[#allocation62_spill]] }
  0xff   :  { %s1266_s28 = sadd.f32 %s280_s9, %s279_s16  ;;  %s290_s16 = smul.f32 %s2188_s10, %s2193_s3 }
 0x100   :  { %s2202_s5 = sld [smem:[#allocation19_spill]] }
 0x101   :  { %2201 = sst [smem:[#allocation29_spill]] %s1266_s28 }
 0x102   :  { %s284_s19 = sadd.f32 %s283_s24, %s282_s25 }
 0x103   :  { %s2205_s8 = sld [smem:[#allocation28_spill]] }
 0x104   :  { %s1275_s26 = sadd.f32 %s507_s14, %s2192_s23  ;;  %s292_s14 = smul.f32 %s2182_s30, %s2194_s12 }
 0x105   :  { %s1277_s9 = sadd.f32 %s285_s18, %s284_s19  ;;  %s293_s23 = smul.f32 %s2185_s17, %s2196_s21 }
 0x106   :  { %2206 = sst [smem:[#allocation31_spill]] %s1275_s26  ;;  %s295_s19 = smul.f32 %s2188_s10, %s2199_s29 }
 0x107   :  { %2207 = sst [smem:[#allocation79_spill]] %s1277_s9  ;;  %s297_s30 = smul.f32 %s2200_s0, %s2181_s1 }
 0x108   :  { %s289_s25 = sadd.f32 %s288_s20, %s287_s2  ;;  %s298_s17 = smul.f32 %s2202_s5, %s2184_s13 }
 0x109   :  { %s2211_s9 = sld [smem:[#allocation83_spill]]  ;;  %s303_s6 = smul.f32 %s2202_s5, %s2191_s15 }
 0x10a   :  { %s1287_s18 = sadd.f32 %s290_s16, %s289_s25  ;;  %s300_s25 = smul.f32 %s2205_s8, %s2187_s22 }
 0x10b   :  { %s2212_s2 = sld [smem:[#allocation23_spill]]  ;;  %s307_s11 = smul.f32 %s2200_s0, %s2194_s12 }
 0x10c   :  { %2210 = sst [smem:[#allocation34_spill]] %s1287_s18  ;;  %s308_s24 = smul.f32 %s2202_s5, %s2196_s21 }
 0x10d   :  { %s294_s20 = sadd.f32 %s293_s23, %s292_s14  ;;  %s302_s23 = smul.f32 %s2200_s0, %s2189_s7 }
 0x10e   :  { %s2213_s26 = sld [smem:[#allocation30_spill]] }
 0x10f   :  { %s1297_s27 = sadd.f32 %s295_s19, %s294_s20  ;;  %s305_s20 = smul.f32 %s2205_s8, %s2193_s3 }
 0x110   :  { %s2215_s16 = sld [smem:[#allocation33_spill]] }
 0x111   :  { %2214 = sst [smem:[#allocation15_spill]] %s1297_s27 }
 0x112   :  { %s299_s14 = sadd.f32 %s298_s17, %s297_s30 }
 0x113   :  { %s2218_s4 = sld [smem:[#allocation29_spill]] }
 0x114   :  { %s1307_s19 = sadd.f32 %s300_s25, %s299_s14  ;;  %s312_s5 = smul.f32 %s2213_s26, %s2181_s1 }
 0x115   :  { %s304_s30 = sadd.f32 %s303_s6, %s302_s23 }
 0x116   :  { %2219 = sst [smem:[#allocation32_spill]] %s1307_s19  ;;  %s310_s19 = smul.f32 %s2205_s8, %s2199_s29 }
 0x117   :  { %s2222_s28 = sadd.f32 1.0, %s2212_s2  ;;  %s313_s2 = smul.f32 %s2215_s16, %s2184_s13 }
 0x118   :  { %s1320_s25 = sadd.f32 %s305_s20, %s304_s30  ;;  %s317_s13 = smul.f32 %s2213_s26, %s2189_s7 }
 0x119   :  { %s1318_s14 = sadd.f32 %s2222_s28, %s2211_s9  ;;  %s315_s8 = smul.f32 %s2218_s4, %s2187_s22 }
 0x11a   :  { %2224 = sst [smem:[#allocation83_spill]] %s1320_s25  ;;  %s318_s18 = smul.f32 %s2215_s16, %s2191_s15 }
 0x11b   :  { %2223 = sst [smem:[#allocation35_spill]] %s1318_s14  ;;  %s323_s27 = smul.f32 %s2215_s16, %s2196_s21 }
 0x11c   :  { %s309_s0 = sadd.f32 %s308_s24, %s307_s11 }
 0x11d   :  { %s2227_s28 = sld [smem:[#allocation63_spill]] }
 0x11e   :  { %s2228_s14 = sld [smem:[#allocation61_spill]] }
 0x11f   :  { %s1330_s20 = sadd.f32 %s310_s19, %s309_s0  ;;  %s322_s0 = smul.f32 %s2213_s26, %s2194_s12 }
 0x120   :  { %s2230_s30 = sld [smem:[#allocation66_spill]] }
 0x121   :  { %2229 = sst [smem:[#allocation23_spill]] %s1330_s20 }
 0x122   :  { %s2231_s25 = sld [smem:[#allocation56_spill]] }
 0x123   :  { %s2232_s11 = sld [smem:[#allocation87_spill]] }
 0x124   :  { %s2233_s24 = sld [smem:[#allocation21_spill]]  ;;  %s327_s21 = smul.f32 %s2228_s14, %s2227_s28 }
 0x125   :  { %s314_s1 = sadd.f32 %s313_s2, %s312_s5  ;;  %s320_s2 = smul.f32 %s2218_s4, %s2193_s3 }
 0x126   :  { %s2234_s9 = sld [smem:[#allocation69_spill]] }
 0x127   :  { %s2235_s10 = sld [smem:[#allocation59_spill]] }
 0x128   :  { %s2236_s19 = sld [smem:[#allocation64_spill]]  ;;  %s328_s6 = smul.f32 %s2231_s25, %s2230_s30 }
 0x129   :  { %s1340_s20 = sadd.f32 %s315_s8, %s314_s1 }
 0x12a   :  { %s2238_s22 = sld [smem:[#allocation67_spill]] }
 0x12b   :  { %2237 = sst [smem:[#allocation63_spill]] %s1340_s20 }
 0x12c   :  { %s319_s15 = sadd.f32 %s318_s18, %s317_s13  ;;  %s325_s13 = smul.f32 %s2218_s4, %s2199_s29 }
 0x12d   :  { %s2241_s17 = sld [smem:[#allocation70_spill]]  ;;  %s330_s29 = smul.f32 %s2235_s10, %s2234_s9 }
 0x12e   :  { %s2242_s8 = sld [smem:[#allocation65_spill]] }
 0x12f   :  { %s1350_s20 = sadd.f32 %s320_s2, %s319_s15 }
 0x130   :  { %s2244_s3 = sld [smem:[#allocation68_spill]] }
 0x131   :  { %2243 = sst [smem:[#allocation66_spill]] %s1350_s20 }
 0x132   :  { %s2245_s18 = sld [smem:[#allocation13_spill]] }
 0x133   :  { %s2246_s12 = sld [smem:[#allocation80_spill]] }
 0x134   :  { %s2247_s26 = sld [smem:[#allocation16_spill]] }
 0x135   :  { %s324_s16 = sadd.f32 %s323_s27, %s322_s0 }
 0x136   :  { %s2248_s1 = sld [smem:[#allocation71_spill]] }
 0x137   :  { %s2249_s23 = sadd.f32 1.0, %s2233_s24 }
 0x138   :  { %s2251_s15 = sld [smem:[#allocation62_spill]] }
 0x139   :  { %s1361_s2 = sadd.f32 %s2249_s23, %s2232_s11  ;;  %s332_s23 = smul.f32 %s2228_s14, %s2236_s19 }
 0x13a   :  { %s1363_s20 = sadd.f32 %s325_s13, %s324_s16  ;;  %s333_s13 = smul.f32 %s2231_s25, %s2238_s22 }
 0x13b   :  { %2250 = sst [smem:[#allocation87_spill]] %s1361_s2 }
 0x13c   :  { %2252 = sst [smem:[#allocation21_spill]] %s1363_s20 }
 0x13d   :  { %s2253_s4 = sld [smem:[#allocation19_spill]] }
 0x13e   :  { %s2254_s0 = sld [smem:[#allocation17_spill]] }
 0x13f   :  { %s2255_s27 = sld [smem:[#allocation81_spill]] }
 0x140   :  { %s2256_s24 = sld [smem:[#allocation12_spill]] }
 0x141   :  { %s329_s11 = sadd.f32 %s328_s6, %s327_s21  ;;  %s335_s6 = smul.f32 %s2235_s10, %s2241_s17 }
 0x142   :  { %s2257_s2 = sld [smem:[#allocation28_spill]] }
 0x143   :  { %s1373_s20 = sadd.f32 %s330_s29, %s329_s11  ;;  %s337_s11 = smul.f32 %s2228_s14, %s2242_s8 }
 0x144   :  { %s2259_s21 = sld [smem:[#allocation27_spill]]  ;;  %s338_s29 = smul.f32 %s2231_s25, %s2244_s3 }
 0x145   :  { %2258 = sst [smem:[#allocation69_spill]] %s1373_s20  ;;  %s340_s14 = smul.f32 %s2235_s10, %s2248_s1 }
 0x146   :  { %s2260_s5 = sld [smem:[#allocation82_spill]] }
 0x147   :  { %s2261_s7 = sld [smem:[#allocation18_spill]] }
 0x148   :  { %s334_s16 = sadd.f32 %s333_s13, %s332_s23 }
 0x149   :  { %s2262_s20 = sadd.f32 %s2246_s12, %s2247_s26 }
 0x14a   :  { %s1387_s23 = sadd.f32 %s335_s6, %s334_s16 }
 0x14b   :  { %s1385_s13 = sadd.f32 %s2262_s20, %s2245_s18  ;;  %s342_s18 = smul.f32 %s2251_s15, %s2227_s28 }
 0x14c   :  { %2264 = sst [smem:[#allocation67_spill]] %s1387_s23  ;;  %s343_s20 = smul.f32 %s2253_s4, %s2230_s30 }
 0x14d   :  { %2263 = sst [smem:[#allocation64_spill]] %s1385_s13 }
 0x14e   :  { %s339_s26 = sadd.f32 %s338_s29, %s337_s11  ;;  %s345_s11 = smul.f32 %s2257_s2, %s2234_s9 }
 0x14f   :  { %s2267_s13 = sadd.f32 %s2255_s27, %s2256_s24 }
 0x150   :  { %s2269_s16 = sld [smem:[#allocation30_spill]] }
 0x151   :  { %s1399_s6 = sadd.f32 %s2267_s13, %s2254_s0  ;;  %s347_s13 = smul.f32 %s2251_s15, %s2236_s19 }
 0x152   :  { %s1401_s23 = sadd.f32 %s340_s14, %s339_s26  ;;  %s348_s14 = smul.f32 %s2253_s4, %s2238_s22 }
 0x153   :  { %2268 = sst [smem:[#allocation70_spill]] %s1399_s6 }
 0x154   :  { %2270 = sst [smem:[#allocation65_spill]] %s1401_s23 }
 0x155   :  { %s2271_s10 = sld [smem:[#allocation33_spill]] }
 0x156   :  { %s2272_s29 = sld [smem:[#allocation57_spill]]  ;;  %s357_s12 = smul.f32 %s2269_s16, %s2227_s28 }
 0x157   :  { %s2273_s24 = sld [smem:[#allocation84_spill]] }
 0x158   :  { %s2274_s27 = sld [smem:[#allocation14_spill]] }
 0x159   :  { %s344_s0 = sadd.f32 %s343_s20, %s342_s18  ;;  %s350_s20 = smul.f32 %s2257_s2, %s2241_s17 }
 0x15a   :  { %s2275_s6 = sld [smem:[#allocation29_spill]] }
 0x15b   :  { %s2276_s26 = sadd.f32 %s2260_s5, %s2261_s7  ;;  %s358_s25 = smul.f32 %s2271_s10, %s2230_s30 }
 0x15c   :  { %s1415_s18 = sadd.f32 %s345_s11, %s344_s0  ;;  %s353_s0 = smul.f32 %s2253_s4, %s2244_s3 }
 0x15d   :  { %s1413_s23 = sadd.f32 %s2276_s26, %s2259_s21 }
 0x15e   :  { %2278 = sst [smem:[#allocation13_spill]] %s1415_s18 }
 0x15f   :  { %2277 = sst [smem:[#allocation68_spill]] %s1413_s23  ;;  %s352_s23 = smul.f32 %s2251_s15, %s2242_s8 }
 0x160   :  { %s2279_s5 = sld [smem:[#allocation60_spill]]  ;;  %s360_s30 = smul.f32 %s2275_s6, %s2234_s9 }
 0x161   :  { %s2280_s7 = sld [smem:[#allocation85_spill]] }
 0x162   :  { %s2281_s21 = sld [smem:[#allocation22_spill]] }
 0x163   :  { %s349_s26 = sadd.f32 %s348_s14, %s347_s13  ;;  %s355_s13 = smul.f32 %s2257_s2, %s2248_s1 }
 0x164   :  { %s2283_s14 = sld [smem:[#allocation55_spill]] }
 0x165   :  { %s1425_s18 = sadd.f32 %s350_s20, %s349_s26 }
 0x166   :  { %s2284_s15 = sld [smem:[#allocation86_spill]] }
 0x167   :  { %2282 = sst [smem:[#allocation80_spill]] %s1425_s18 }
 0x168   :  { %s2285_s4 = sld [smem:[#allocation24_spill]] }
 0x169   :  { %s354_s11 = sadd.f32 %s353_s0, %s352_s23 }
 0x16a   :  { %s2286_s20 = sadd.f32 %s2273_s24, %s2274_s27 }
 0x16b   :  { %s2288_s18 = sld [smem:[#allocation36_spill]] }
 0x16c   :  { %s1437_s26 = sadd.f32 %s2286_s20, %s2272_s29  ;;  %s362_s29 = smul.f32 %s2269_s16, %s2236_s19 }
 0x16d   :  { %s2289_s2 = sld [smem:[#allocation69_spill]] }
 0x16e   :  { %2287 = sst [smem:[#allocation16_spill]] %s1437_s26 }
 0x16f   :  { %s1439_s0 = sadd.f32 %s355_s13, %s354_s11  ;;  %s363_s13 = smul.f32 %s2271_s10, %s2238_s22 }
 0x170   :  { %s2291_s23 = sld [smem:[#allocation39_spill]]  ;;  %s365_s22 = smul.f32 %s2275_s6, %s2241_s17 }
 0x171   :  { %2290 = sst [smem:[#allocation71_spill]] %s1439_s0 }
 0x172   :  { %s2292_s28 = sld [smem:[#allocation67_spill]] }
 0x173   :  { %s359_s20 = sadd.f32 %s358_s25, %s357_s12 }
 0x174   :  { %s2295_s26 = sld [smem:[#allocation42_spill]] }
 0x175   :  { %s2296_s11 = sld [smem:[#allocation65_spill]] }
 0x176   :  { %s2297_s0 = sadd.f32 %s2280_s7, %s2281_s21 }
 0x177   :  { %s2299_s12 = sld [smem:[#allocation37_spill]] }
 0x178   :  { %s1451_s9 = sadd.f32 %s2297_s0, %s2279_s5 }
 0x179   :  { %s1453_s25 = sadd.f32 %s360_s30, %s359_s20  ;;  %s368_s30 = smul.f32 %s2271_s10, %s2244_s3 }
 0x17a   :  { %2298 = sst [smem:[#allocation17_spill]] %s1451_s9  ;;  %s367_s9 = smul.f32 %s2269_s16, %s2242_s8 }
 0x17b   :  { %2300 = sst [smem:[#allocation81_spill]] %s1453_s25  ;;  %s370_s16 = smul.f32 %s2275_s6, %s2248_s1 }
 0x17c   :  { %s2301_s19 = sld [smem:[#allocation40_spill]]  ;;  %s375_s1 = smul.f32 %s2296_s11, %s2295_s26 }
 0x17d   :  { %s2302_s7 = sld [smem:[#allocation61_spill]] }
 0x17e   :  { %s2303_s21 = sld [smem:[#allocation31_spill]] }
 0x17f   :  { %s2304_s0 = sld [smem:[#allocation26_spill]] }
 0x180   :  { %s364_s5 = sadd.f32 %s363_s13, %s362_s29 }
 0x181   :  { %s2305_s20 = sld [smem:[#allocation43_spill]] }
 0x182   :  { %s2306_s25 = sadd.f32 %s2284_s15, %s2285_s4  ;;  %s372_s15 = smul.f32 %s2289_s2, %s2288_s18 }
 0x183   :  { %s2308_s13 = sld [smem:[#allocation38_spill]]  ;;  %s378_s27 = smul.f32 %s2292_s28, %s2301_s19 }
 0x184   :  { %s1465_s17 = sadd.f32 %s2306_s25, %s2283_s14  ;;  %s373_s25 = smul.f32 %s2292_s28, %s2291_s23 }
 0x185   :  { %s1467_s29 = sadd.f32 %s365_s22, %s364_s5 }
 0x186   :  { %2307 = sst [smem:[#allocation12_spill]] %s1465_s17  ;;  %s377_s17 = smul.f32 %s2289_s2, %s2299_s12 }
 0x187   :  { %2309 = sst [smem:[#allocation27_spill]] %s1467_s29 }
 0x188   :  { %s2310_s8 = sld [smem:[#allocation41_spill]] }
 0x189   :  { %s369_s4 = sadd.f32 %s368_s30, %s367_s9 }
 0x18a   :  { %s2313_s14 = sld [smem:[#allocation44_spill]] }
 0x18b   :  { %s2314_s5 = sld [smem:[#allocation13_spill]] }
 0x18c   :  { %s1477_s22 = sadd.f32 %s370_s16, %s369_s4 }
 0x18d   :  { %s2316_s29 = sld [smem:[#allocation80_spill]] }
 0x18e   :  { %2315 = sst [smem:[#allocation82_spill]] %s1477_s22 }
 0x18f   :  { %s374_s30 = sadd.f32 %s373_s25, %s372_s15  ;;  %s380_s15 = smul.f32 %s2296_s11, %s2305_s20 }
 0x190   :  { %s2319_s24 = sld [smem:[#allocation71_spill]] }
 0x191   :  { %s2320_s4 = sadd.f32 %s2303_s21, %s2304_s0  ;;  %s392_s6 = smul.f32 %s2314_s5, %s2299_s12 }
 0x192   :  { %s1491_s22 = sadd.f32 %s375_s1, %s374_s30  ;;  %s385_s30 = smul.f32 %s2296_s11, %s2313_s14 }
 0x193   :  { %s1489_s16 = sadd.f32 %s2320_s4, %s2302_s7  ;;  %s382_s4 = smul.f32 %s2289_s2, %s2308_s13 }
 0x194   :  { %2322 = sst [smem:[#allocation57_spill]] %s1491_s22  ;;  %s383_s7 = smul.f32 %s2292_s28, %s2310_s8 }
 0x195   :  { %2321 = sst [smem:[#allocation18_spill]] %s1489_s16  ;;  %s387_s28 = smul.f32 %s2314_s5, %s2288_s18 }
 0x196   :  { %s379_s21 = sadd.f32 %s378_s27, %s377_s17  ;;  %s388_s3 = smul.f32 %s2316_s29, %s2291_s23 }
 0x197   :  { %s2326_s22 = sld [smem:[#allocation19_spill]]  ;;  %s393_s10 = smul.f32 %s2316_s29, %s2301_s19 }
 0x198   :  { %s1501_s1 = sadd.f32 %s380_s15, %s379_s21  ;;  %s398_s25 = smul.f32 %s2316_s29, %s2310_s8 }
 0x199   :  { %s2327_s17 = sld [smem:[#allocation35_spill]] }
 0x19a   :  { %2325 = sst [smem:[#allocation84_spill]] %s1501_s1  ;;  %s390_s1 = smul.f32 %s2319_s24, %s2295_s26 }
 0x19b   :  { %s2328_s27 = sld [smem:[#allocation54_spill]] }
 0x19c   :  { %s384_s2 = sadd.f32 %s383_s7, %s382_s4 }
 0x19d   :  { %s2329_s16 = sld [smem:[#allocation81_spill]] }
 0x19e   :  { %s1511_s15 = sadd.f32 %s385_s30, %s384_s2  ;;  %s397_s2 = smul.f32 %s2314_s5, %s2308_s13 }
 0x19f   :  { %s2331_s21 = sld [smem:[#allocation27_spill]] }
 0x1a0   :  { %2330 = sst [smem:[#allocation14_spill]] %s1511_s15  ;;  %s395_s15 = smul.f32 %s2319_s24, %s2305_s20 }
 0x1a1   :  { %s389_s7 = sadd.f32 %s388_s3, %s387_s28 }
 0x1a2   :  { %s2334_s9 = sld [smem:[#allocation82_spill]] }
 0x1a3   :  { %s1521_s30 = sadd.f32 %s390_s1, %s389_s7  ;;  %s412_s28 = smul.f32 %s2329_s16, %s2308_s13 }
 0x1a4   :  { %s394_s0 = sadd.f32 %s393_s10, %s392_s6  ;;  %s400_s6 = smul.f32 %s2319_s24, %s2313_s14 }
 0x1a5   :  { %2335 = sst [smem:[#allocation60_spill]] %s1521_s30 }
 0x1a6   :  { %s2338_s1 = sadd.f32 %s2327_s17, %s2328_s27  ;;  %s402_s17 = smul.f32 %s2329_s16, %s2288_s18 }
 0x1a7   :  { %s1535_s30 = sadd.f32 %s395_s15, %s394_s0  ;;  %s403_s27 = smul.f32 %s2331_s21, %s2291_s23 }
 0x1a8   :  { %s1533_s7 = sadd.f32 %s2338_s1, %s2326_s22  ;;  %s405_s24 = smul.f32 %s2334_s9, %s2295_s26 }
 0x1a9   :  { %2340 = sst [smem:[#allocation22_spill]] %s1535_s30  ;;  %s407_s1 = smul.f32 %s2329_s16, %s2299_s12 }
 0x1aa   :  { %2339 = sst [smem:[#allocation85_spill]] %s1533_s7 }
 0x1ab   :  { %s399_s29 = sadd.f32 %s398_s25, %s397_s2 }
 0x1ac   :  { %s2343_s22 = sld [smem:[#allocation72_spill]] }
 0x1ad   :  { %s2344_s7 = sld [smem:[#allocation69_spill]] }
 0x1ae   :  { %s1545_s0 = sadd.f32 %s400_s6, %s399_s29  ;;  %s408_s6 = smul.f32 %s2331_s21, %s2301_s19 }
 0x1af   :  { %s2346_s15 = sld [smem:[#allocation75_spill]] }
 0x1b0   :  { %2345 = sst [smem:[#allocation55_spill]] %s1545_s0 }
 0x1b1   :  { %s2347_s30 = sld [smem:[#allocation67_spill]] }
 0x1b2   :  { %s2348_s2 = sld [smem:[#allocation29_spill]] }
 0x1b3   :  { %s2349_s25 = sld [smem:[#allocation87_spill]]  ;;  %s417_s5 = smul.f32 %s2344_s7, %s2343_s22 }
 0x1b4   :  { %s2350_s18 = sld [smem:[#allocation58_spill]] }
 0x1b5   :  { %s404_s23 = sadd.f32 %s403_s27, %s402_s17  ;;  %s410_s27 = smul.f32 %s2334_s9, %s2305_s20 }
 0x1b6   :  { %s2351_s4 = sld [smem:[#allocation20_spill]] }
 0x1b7   :  { %s2352_s11 = sld [smem:[#allocation65_spill]] }
 0x1b8   :  { %s2353_s0 = sld [smem:[#allocation73_spill]] }
 0x1b9   :  { %s1555_s26 = sadd.f32 %s405_s24, %s404_s23  ;;  %s413_s23 = smul.f32 %s2331_s21, %s2310_s8 }
 0x1ba   :  { %s2355_s17 = sld [smem:[#allocation76_spill]]  ;;  %s418_s24 = smul.f32 %s2347_s30, %s2346_s15 }
 0x1bb   :  { %2354 = sst [smem:[#allocation86_spill]] %s1555_s26 }
 0x1bc   :  { %s409_s3 = sadd.f32 %s408_s6, %s407_s1  ;;  %s415_s6 = smul.f32 %s2334_s9, %s2313_s14 }
 0x1bd   :  { %s2358_s29 = sld [smem:[#allocation25_spill]] }
 0x1be   :  { %s2359_s26 = sld [smem:[#allocation74_spill]] }
 0x1bf   :  { %s1565_s20 = sadd.f32 %s410_s27, %s409_s3 }
 0x1c0   :  { %s2361_s1 = sld [smem:[#allocation77_spill]] }
 0x1c1   :  { %2360 = sst [smem:[#allocation24_spill]] %s1565_s20 }
 0x1c2   :  { %s2362_s13 = sld [smem:[#allocation34_spill]] }
 0x1c3   :  { %s2363_s16 = sld [smem:[#allocation64_spill]] }
 0x1c4   :  { %s2364_s8 = sld [smem:[#allocation56_spill]] }
 0x1c5   :  { %s414_s21 = sadd.f32 %s413_s23, %s412_s28  ;;  %s420_s23 = smul.f32 %s2352_s11, %s2351_s4 }
 0x1c6   :  { %s2365_s10 = sld [smem:[#allocation78_spill]] }
 0x1c7   :  { %s2366_s3 = sadd.f32 %s2349_s25, %s2350_s18 }
 0x1c8   :  { %s2368_s20 = sld [smem:[#allocation13_spill]] }
 0x1c9   :  { %s1577_s27 = sadd.f32 %s2366_s3, %s2348_s2  ;;  %s422_s3 = smul.f32 %s2344_s7, %s2353_s0 }
 0x1ca   :  { %s1579_s9 = sadd.f32 %s415_s6, %s414_s21  ;;  %s423_s6 = smul.f32 %s2347_s30, %s2355_s17 }
 0x1cb   :  { %2367 = sst [smem:[#allocation36_spill]] %s1577_s27 }
 0x1cc   :  { %2369 = sst [smem:[#allocation39_spill]] %s1579_s9 }
 0x1cd   :  { %s2370_s14 = sld [smem:[#allocation80_spill]] }
 0x1ce   :  { %s2371_s28 = sld [smem:[#allocation15_spill]] }
 0x1cf   :  { %s2372_s18 = sld [smem:[#allocation70_spill]] }
 0x1d0   :  { %s2373_s25 = sld [smem:[#allocation59_spill]] }
 0x1d1   :  { %s419_s2 = sadd.f32 %s418_s24, %s417_s5  ;;  %s425_s5 = smul.f32 %s2352_s11, %s2358_s29 }
 0x1d2   :  { %s2374_s27 = sld [smem:[#allocation71_spill]] }
 0x1d3   :  { %s1589_s9 = sadd.f32 %s420_s23, %s419_s2  ;;  %s427_s2 = smul.f32 %s2344_s7, %s2359_s26 }
 0x1d4   :  { %s2376_s24 = sld [smem:[#allocation32_spill]]  ;;  %s428_s23 = smul.f32 %s2347_s30, %s2361_s1 }
 0x1d5   :  { %2375 = sst [smem:[#allocation42_spill]] %s1589_s9  ;;  %s430_s7 = smul.f32 %s2352_s11, %s2365_s10 }
 0x1d6   :  { %s2377_s12 = sld [smem:[#allocation68_spill]] }
 0x1d7   :  { %s2378_s19 = sld [smem:[#allocation62_spill]] }
 0x1d8   :  { %s424_s21 = sadd.f32 %s423_s6, %s422_s3 }
 0x1d9   :  { %s2379_s9 = sadd.f32 %s2363_s16, %s2364_s8 }
 0x1da   :  { %s1603_s6 = sadd.f32 %s425_s5, %s424_s21 }
 0x1db   :  { %s1601_s3 = sadd.f32 %s2379_s9, %s2362_s13  ;;  %s432_s9 = smul.f32 %s2368_s20, %s2343_s22 }
 0x1dc   :  { %2381 = sst [smem:[#allocation40_spill]] %s1603_s6  ;;  %s433_s13 = smul.f32 %s2370_s14, %s2346_s15 }
 0x1dd   :  { %2380 = sst [smem:[#allocation37_spill]] %s1601_s3 }
 0x1de   :  { %s429_s16 = sadd.f32 %s428_s23, %s427_s2  ;;  %s435_s2 = smul.f32 %s2374_s27, %s2351_s4 }
 0x1df   :  { %s2384_s3 = sadd.f32 %s2372_s18, %s2373_s25 }
 0x1e0   :  { %s2386_s21 = sld [smem:[#allocation81_spill]] }
 0x1e1   :  { %s1615_s5 = sadd.f32 %s2384_s3, %s2371_s28  ;;  %s437_s28 = smul.f32 %s2368_s20, %s2353_s0 }
 0x1e2   :  { %s1617_s6 = sadd.f32 %s430_s7, %s429_s16  ;;  %s438_s7 = smul.f32 %s2370_s14, %s2355_s17 }
 0x1e3   :  { %2385 = sst [smem:[#allocation61_spill]] %s1615_s5 }
 0x1e4   :  { %2387 = sst [smem:[#allocation31_spill]] %s1617_s6 }
 0x1e5   :  { %s2388_s11 = sld [smem:[#allocation27_spill]] }
 0x1e6   :  { %s2389_s23 = sld [smem:[#allocation23_spill]]  ;;  %s447_s8 = smul.f32 %s2386_s21, %s2343_s22 }
 0x1e7   :  { %s2390_s18 = sld [smem:[#allocation16_spill]] }
 0x1e8   :  { %s2391_s25 = sld [smem:[#allocation28_spill]] }
 0x1e9   :  { %s434_s3 = sadd.f32 %s433_s13, %s432_s9  ;;  %s440_s13 = smul.f32 %s2374_s27, %s2358_s29 }
 0x1ea   :  { %s2392_s5 = sld [smem:[#allocation82_spill]] }
 0x1eb   :  { %s2393_s16 = sadd.f32 %s2377_s12, %s2378_s19  ;;  %s448_s30 = smul.f32 %s2388_s11, %s2346_s15 }
 0x1ec   :  { %s1631_s9 = sadd.f32 %s435_s2, %s434_s3  ;;  %s443_s2 = smul.f32 %s2370_s14, %s2361_s1 }
 0x1ed   :  { %s1629_s6 = sadd.f32 %s2393_s16, %s2376_s24 }
 0x1ee   :  { %2395 = sst [smem:[#allocation43_spill]] %s1631_s9 }
 0x1ef   :  { %2394 = sst [smem:[#allocation26_spill]] %s1629_s6  ;;  %s442_s6 = smul.f32 %s2368_s20, %s2359_s26 }
 0x1f0   :  { %s2396_s12 = sld [smem:[#allocation63_spill]]  ;;  %s450_s15 = smul.f32 %s2392_s5, %s2351_s4 }
 0x1f1   :  { %s2397_s19 = sld [smem:[#allocation17_spill]] }
 0x1f2   :  { %s2398_s16 = sld [smem:[#allocation30_spill]] }
 0x1f3   :  { %s439_s24 = sadd.f32 %s438_s7, %s437_s28  ;;  %s445_s7 = smul.f32 %s2374_s27, %s2365_s10 }
 0x1f4   :  { %s2400_s28 = sld [smem:[#allocation66_spill]] }
 0x1f5   :  { %s1641_s9 = sadd.f32 %s440_s13, %s439_s24 }
 0x1f6   :  { %s2401_s20 = sld [smem:[#allocation12_spill]] }
 0x1f7   :  { %2399 = sst [smem:[#allocation38_spill]] %s1641_s9 }
 0x1f8   :  { %s2402_s14 = sld [smem:[#allocation33_spill]] }
 0x1f9   :  { %s444_s3 = sadd.f32 %s443_s2, %s442_s6 }
 0x1fa   :  { %s2403_s13 = sadd.f32 %s2390_s18, %s2391_s25 }
 0x1fb   :  { %s2405_s9 = sld [smem:[#allocation45_spill]] }
 0x1fc   :  { %s1653_s24 = sadd.f32 %s2403_s13, %s2389_s23  ;;  %s452_s23 = smul.f32 %s2386_s21, %s2353_s0 }
 0x1fd   :  { %s2406_s27 = sld [smem:[#allocation42_spill]] }
 0x1fe   :  { %2404 = sst [smem:[#allocation41_spill]] %s1653_s24 }
 0x1ff   :  { %s1655_s2 = sadd.f32 %s445_s7, %s444_s3  ;;  %s453_s7 = smul.f32 %s2388_s11, %s2355_s17 }
 0x200   :  { %s2408_s6 = sld [smem:[#allocation48_spill]]  ;;  %s455_s17 = smul.f32 %s2392_s5, %s2358_s29 }
 0x201   :  { %2407 = sst [smem:[#allocation44_spill]] %s1655_s2 }
 0x202   :  { %s2409_s22 = sld [smem:[#allocation40_spill]] }
 0x203   :  { %s449_s13 = sadd.f32 %s448_s30, %s447_s8 }
 0x204   :  { %s2412_s24 = sld [smem:[#allocation51_spill]] }
 0x205   :  { %s2413_s3 = sld [smem:[#allocation31_spill]] }
 0x206   :  { %s2414_s2 = sadd.f32 %s2397_s19, %s2398_s16 }
 0x207   :  { %s2416_s8 = sld [smem:[#allocation46_spill]] }
 0x208   :  { %s1667_s4 = sadd.f32 %s2414_s2, %s2396_s12 }
 0x209   :  { %s1669_s30 = sadd.f32 %s450_s15, %s449_s13  ;;  %s458_s15 = smul.f32 %s2388_s11, %s2361_s1 }
 0x20a   :  { %2415 = sst [smem:[#allocation19_spill]] %s1667_s4  ;;  %s457_s4 = smul.f32 %s2386_s21, %s2359_s26 }
 0x20b   :  { %2417 = sst [smem:[#allocation35_spill]] %s1669_s30  ;;  %s460_s26 = smul.f32 %s2392_s5, %s2365_s10 }
 0x20c   :  { %s2418_s0 = sld [smem:[#allocation49_spill]]  ;;  %s465_s5 = smul.f32 %s2413_s3, %s2412_s24 }
 0x20d   :  { %s2419_s16 = sld [smem:[#allocation69_spill]]  ;;  %s467_s18 = smul.f32 %s2406_s27, %s2416_s8 }
 0x20e   :  { %s2420_s19 = sld [smem:[#allocation18_spill]] }
 0x20f   :  { %s2421_s2 = sld [smem:[#allocation79_spill]] }
 0x210   :  { %s454_s12 = sadd.f32 %s453_s7, %s452_s23 }
 0x211   :  { %s2422_s13 = sld [smem:[#allocation52_spill]] }
 0x212   :  { %s2423_s30 = sadd.f32 %s2401_s20, %s2402_s14  ;;  %s462_s20 = smul.f32 %s2406_s27, %s2405_s9 }
 0x213   :  { %s2425_s7 = sld [smem:[#allocation47_spill]] }
 0x214   :  { %s1681_s29 = sadd.f32 %s2423_s30, %s2400_s28  ;;  %s463_s30 = smul.f32 %s2409_s22, %s2408_s6 }
 0x215   :  { %s1683_s23 = sadd.f32 %s455_s17, %s454_s12 }
 0x216   :  { %2424 = sst [smem:[#allocation54_spill]] %s1681_s29  ;;  %s468_s29 = smul.f32 %s2409_s22, %s2418_s0 }
 0x217   :  { %2426 = sst [smem:[#allocation72_spill]] %s1683_s23 }
 0x218   :  { %s2427_s21 = sld [smem:[#allocation50_spill]] }
 0x219   :  { %s459_s14 = sadd.f32 %s458_s15, %s457_s4 }
 0x21a   :  { %s2430_s28 = sld [smem:[#allocation53_spill]] }
 0x21b   :  { %s2431_s12 = sld [smem:[#allocation43_spill]] }
 0x21c   :  { %s1693_s17 = sadd.f32 %s460_s26, %s459_s14 }
 0x21d   :  { %s2433_s23 = sld [smem:[#allocation38_spill]] }
 0x21e   :  { %2432 = sst [smem:[#allocation75_spill]] %s1693_s17 }
 0x21f   :  { %s464_s15 = sadd.f32 %s463_s30, %s462_s20  ;;  %s470_s20 = smul.f32 %s2413_s3, %s2422_s13 }
 0x220   :  { %s2436_s25 = sld [smem:[#allocation44_spill]] }
 0x221   :  { %s2437_s14 = sadd.f32 %s2420_s19, %s2421_s2  ;;  %s482_s4 = smul.f32 %s2431_s12, %s2416_s8 }
 0x222   :  { %s1707_s17 = sadd.f32 %s465_s5, %s464_s15  ;;  %s475_s15 = smul.f32 %s2413_s3, %s2430_s28 }
 0x223   :  { %s1705_s26 = sadd.f32 %s2437_s14, %s2419_s16  ;;  %s472_s14 = smul.f32 %s2406_s27, %s2425_s7 }
 0x224   :  { %2439 = sst [smem:[#allocation87_spill]] %s1707_s17  ;;  %s473_s16 = smul.f32 %s2409_s22, %s2427_s21 }
 0x225   :  { %2438 = sst [smem:[#allocation29_spill]] %s1705_s26  ;;  %s477_s22 = smul.f32 %s2431_s12, %s2405_s9 }
 0x226   :  { %s469_s19 = sadd.f32 %s468_s29, %s467_s18  ;;  %s478_s1 = smul.f32 %s2433_s23, %s2408_s6 }
 0x227   :  { %s2443_s17 = sld [smem:[#allocation80_spill]]  ;;  %s483_s11 = smul.f32 %s2433_s23, %s2418_s0 }
 0x228   :  { %s1717_s5 = sadd.f32 %s470_s20, %s469_s19  ;;  %s488_s30 = smul.f32 %s2433_s23, %s2427_s21 }
 0x229   :  { %s2444_s18 = sld [smem:[#allocation85_spill]] }
 0x22a   :  { %2442 = sst [smem:[#allocation58_spill]] %s1717_s5  ;;  %s480_s5 = smul.f32 %s2436_s25, %s2412_s24 }
 0x22b   :  { %s2445_s29 = sld [smem:[#allocation83_spill]] }
 0x22c   :  { %s474_s27 = sadd.f32 %s473_s16, %s472_s14 }
 0x22d   :  { %s2446_s26 = sld [smem:[#allocation35_spill]] }
 0x22e   :  { %s1727_s19 = sadd.f32 %s475_s15, %s474_s27  ;;  %s487_s15 = smul.f32 %s2431_s12, %s2425_s7 }
 0x22f   :  { %s2448_s20 = sld [smem:[#allocation72_spill]] }
 0x230   :  { %2447 = sst [smem:[#allocation20_spill]] %s1727_s19  ;;  %s485_s19 = smul.f32 %s2436_s25, %s2422_s13 }
 0x231   :  { %s2449_s3 = sld [smem:[#allocation71_spill]] }
 0x232   :  { %s2450_s14 = sld [smem:[#allocation41_spill]] }
 0x233   :  { %s479_s16 = sadd.f32 %s478_s1, %s477_s22 }
 0x234   :  { %s2451_s10 = sld [smem:[#allocation75_spill]] }
 0x235   :  { %s1737_s27 = sadd.f32 %s480_s5, %s479_s16 }
 0x236   :  { %s2453_s1 = sld [smem:[#allocation81_spill]] }
 0x237   :  { %2452 = sst [smem:[#allocation73_spill]] %s1737_s27 }
 0x238   :  { %s2454_s22 = sld [smem:[#allocation19_spill]] }
 0x239   :  { %s484_s2 = sadd.f32 %s483_s11, %s482_s4  ;;  %s490_s4 = smul.f32 %s2436_s25, %s2430_s28 }
 0x23a   :  { %s2455_s5 = sadd.f32 %s2444_s18, %s2445_s29  ;;  %s492_s18 = smul.f32 %s2446_s26, %s2405_s9 }
 0x23b   :  { %s1751_s27 = sadd.f32 %s485_s19, %s484_s2  ;;  %s493_s29 = smul.f32 %s2448_s20, %s2408_s6 }
 0x23c   :  { %s1749_s16 = sadd.f32 %s2455_s5, %s2443_s17 }
 0x23d   :  { %2457 = sst [smem:[#allocation25_spill]] %s1751_s27  ;;  %s495_s27 = smul.f32 %s2451_s10, %s2412_s24 }
 0x23e   :  { %2456 = sst [smem:[#allocation76_spill]] %s1749_s16  ;;  %s498_s24 = smul.f32 %s2448_s20, %s2418_s0 }
 0x23f   :  { %s2458_s11 = sld [smem:[#allocation27_spill]] }
 0x240   :  { %s2459_s12 = sld [smem:[#allocation54_spill]] }
 0x241   :  { %s489_s23 = sadd.f32 %s488_s30, %s487_s15 }
 0x242   :  { %s557_s5 = sadd.f32 %s2450_s14, %s2449_s3  ;;  %s497_s14 = smul.f32 %s2446_s26, %s2416_s8 }
 0x243   :  { %s2460_s17 = sld [smem:[#allocation82_spill]] }
 0x244   :  { %s2461_s16 = sld [smem:[#allocation36_spill]] }
 0x245   :  { %s2462_s2 = sld [smem:[#allocation21_spill]] }
 0x246   :  { %s1761_s19 = sadd.f32 %s490_s4, %s489_s23 }
 0x247   :  { %s2464_s25 = sld [smem:[#allocation57_spill]] }
 0x248   :  { %2463 = sst [smem:[#allocation74_spill]] %s1761_s19 }
 0x249   :  { %s2465_s15 = sld [smem:[#allocation29_spill]] }
 0x24a   :  { %s494_s30 = sadd.f32 %s493_s29, %s492_s18 }
 0x24b   :  { %s2466_s9 = sld [smem:[#allocation84_spill]] }
 0x24c   :  { %s2467_s6 = sld [smem:[#allocation37_spill]] }
 0x24d   :  { %s2468_s3 = sld [smem:[#allocation67_spill]] }
 0x24e   :  { %s2469_s4 = sld [smem:[#allocation14_spill]] }
 0x24f   :  { %s2470_s23 = sld [smem:[#allocation61_spill]] }
 0x250   :  { %s2471_s19 = sld [smem:[#allocation65_spill]] }
 0x251   :  { %s2472_s18 = sld [smem:[#allocation60_spill]] }
 0x252   :  { %s558_s29 = sadd.f32 %s2454_s22, %s2453_s1  ;;  %s500_s22 = smul.f32 %s2451_s10, %s2422_s13 }
 0x253   :  { %s2473_s8 = sld [smem:[#allocation26_spill]] }
 0x254   :  { %s1771_s0 = sadd.f32 %s495_s27, %s494_s30 }
 0x255   :  { %s2475_s1 = sld [smem:[#allocation13_spill]] }
 0x256   :  { %2474 = sst [smem:[#allocation77_spill]] %s1771_s0 }
 0x257   :  { %s2476_s27 = sld [smem:[#allocation22_spill]] }
 0x258   :  { %s2477_s30 = sld [smem:[#allocation76_spill]] }
 0x259   :  { %s499_s0 = sadd.f32 %s498_s24, %s497_s14  ;;  %s502_s14 = smul.f32 %s2446_s26, %s2425_s7 }
 0x25a   :  { %s2478_s13 = sld [smem:[#allocation55_spill]]  ;;  %s503_s7 = smul.f32 %s2448_s20, %s2427_s21 }
 0x25b   :  { %s2479_s24 = sld [smem:[#allocation86_spill]] }
 0x25c   :  { %s2480_s26 = sld [smem:[#allocation24_spill]] }
 0x25d   :  { %s559_s20 = sadd.f32 %s2459_s12, %s2458_s11 }
 0x25e   :  { %s2481_s21 = sld [smem:[#allocation39_spill]] }
 0x25f   :  { %s1781_s11 = sadd.f32 %s500_s22, %s499_s0  ;;  %s505_s0 = smul.f32 %s2451_s10, %s2430_s28 }
 0x260   :  { %s2483_s12 = sld [smem:[#allocation42_spill]] }
 0x261   :  { %2482 = sst [smem:[#allocation34_spill]] %s1781_s11 }
 0x262   :  { %s2484_s22 = sld [smem:[#allocation40_spill]] }
 0x263   :  { %s2485_s11 = sld [smem:[#allocation31_spill]] }
 0x264   :  { %s504_s10 = sadd.f32 %s503_s7, %s502_s14 }
 0x265   :  { %s2486_s28 = sadd.f32 %s2461_s16, %s2462_s2 }
 0x266   :  { %s2487_s14 = sld [smem:[#allocation43_spill]] }
 0x267   :  { %s560_s7 = sadd.f32 %s2486_s28, %s2460_s17 }
 0x268   :  { %s2488_s2 = sld [smem:[#allocation38_spill]] }
 0x269   :  { %s2489_s16 = sld [smem:[#allocation44_spill]] }
 0x26a   :  { %s1789_s17 = sadd.f32 %s505_s0, %s504_s10 }
 0x26b   :  { %s2491_s28 = sld [smem:[#allocation35_spill]] }
 0x26c   :  { %2490 = sst [smem:[#allocation64_spill]] %s1789_s17 }
 0x26d   :  { %s561_s0 = sadd.f32 %s2465_s15, %s2464_s25 }
 0x26e   :  { %s2492_s10 = sadd.f32 %s2467_s6, %s2468_s3 }
 0x26f   :  { %s2493_s17 = sld [smem:[#allocation72_spill]] }
 0x270   :  { %s562_s15 = sadd.f32 %s2492_s10, %s2466_s9 }
 0x271   :  { %s2494_s25 = sadd.f32 %s2470_s23, %s2471_s19 }
 0x272   :  { %s2495_s3 = sld [smem:[#allocation75_spill]] }
 0x273   :  { %s563_s6 = sadd.f32 %s2494_s25, %s2469_s4 }
 0x274   :  { %s2496_s9 = sadd.f32 %s2473_s8, %s2475_s1 }
 0x275   :  { %s2497_s10 = sld [smem:[#allocation87_spill]] }
 0x276   :  { %s564_s19 = sadd.f32 %s2496_s9, %s2472_s18 }
 0x277   :  { %s2498_s23 = sld [smem:[#allocation58_spill]] }
 0x278   :  { %s565_s4 = sadd.f32 %s2477_s30, %s2476_s27 }
 0x279   :  { %s2499_s25 = sld [smem:[#allocation20_spill]] }
 0x27a   :  { %s566_s1 = sadd.f32 %s557_s5, %s2478_s13 }
 0x27b   :  { %s2500_s8 = sld [smem:[#allocation73_spill]] }
 0x27c   :  { %s567_s9 = sadd.f32 %s558_s29, %s2479_s24 }
 0x27d   :  { %s2501_s18 = sld [smem:[#allocation25_spill]] }
 0x27e   :  { %s568_s27 = sadd.f32 %s559_s20, %s2480_s26 }
 0x27f   :  { %s2502_s30 = sld [smem:[#allocation74_spill]] }
 0x280   :  { %s569_s5 = sadd.f32 %s560_s7, %s2481_s21 }
 0x281   :  { %s2503_s13 = sld [smem:[#allocation77_spill]] }
 0x282   :  { %s570_s24 = sadd.f32 %s561_s0, %s2483_s12 }
 0x283   :  { %s2504_s29 = sld [smem:[#allocation34_spill]] }
 0x284   :  { %s571_s20 = sadd.f32 %s562_s15, %s2484_s22 }
 0x285   :  { %s2505_s26 = sld [smem:[#allocation64_spill]] }
 0x286   :  { %s572_s7 = sadd.f32 %s563_s6, %s2485_s11 }
 0x287   :  { %s573_s21 = sadd.f32 %s564_s19, %s2487_s14 }
 0x288   :  { %s574_s0 = sadd.f32 %s565_s4, %s2488_s2 }
 0x289   :  { %s575_s12 = sadd.f32 %s566_s1, %s2489_s16 }
 0x28a   :  { %s576_s15 = sadd.f32 %s567_s9, %s2491_s28 }
 0x28b   :  { %s577_s22 = sadd.f32 %s568_s27, %s2493_s17  ;;  %s699_s17 = smov 0.0  }
 0x28c   :  { %s578_s6 = sadd.f32 %s569_s5, %s2495_s3 }
 0x28d   :  { %s579_s11 = sadd.f32 %s570_s24, %s2497_s10 }
 0x28e   :  { %s580_s14 = sadd.f32 %s571_s20, %s2498_s23 }
 0x28f   :  { %s581_s19 = sadd.f32 %s572_s7, %s2499_s25 }
 0x290   :  { %s582_s2 = sadd.f32 %s573_s21, %s2500_s8 }
 0x291   :  { %s583_s4 = sadd.f32 %s574_s0, %s2501_s18 }
 0x292   :  { %s584_s1 = sadd.f32 %s575_s12, %s2502_s30 }
 0x293   :  { %s585_s16 = sadd.f32 %s576_s15, %s2503_s13 }
 0x294   :  { %s586_s9 = sadd.f32 %s577_s22, %s2504_s29 }
 0x295   :  { %s587_s28 = sadd.f32 %s578_s6, %s2505_s26 }
 0x296   :  { %589 = sst [smem:[#allocation8]] %s579_s11 }
 0x297   :  { %591 = sst [smem:[#allocation8 + $0x1]] %s580_s14 }
 0x298   :  { %593 = sst [smem:[#allocation8 + $0x2]] %s581_s19 }
 0x299   :  { %595 = sst [smem:[#allocation8 + $0x3]] %s582_s2 }
 0x29a   :  { %597 = sst [smem:[#allocation8 + $0x4]] %s583_s4 }
 0x29b   :  { %599 = sst [smem:[#allocation8 + $0x5]] %s584_s1 }
 0x29c   :  { %601 = sst [smem:[#allocation8 + $0x6]] %s585_s16 }
 0x29d   :  { %603 = sst [smem:[#allocation8 + $0x7]] %s586_s9 }
 0x29e   :  { %605 = sst [smem:[#allocation8 + $0x8]] %s587_s28 }
 0x29f   :  { %607 = sst [smem:[#allocation8 + $0x9]] %s699_s17 }
 0x2a0   :  { %s2506_s23 = sld [smem:[#allocation88_spill]] }
 0x2a1   :  { %609 = sst [smem:[#allocation8 + $0xa]] %s699_s17 }
 0x2a2   :  { %611 = sst [smem:[#allocation8 + $0xb]] %s699_s17 }
 0x2a3   :  { %613 = sst [smem:[#allocation8 + $0xc]] %s699_s17 }
 0x2a4   :  { %615 = sst [smem:[#allocation8 + $0xd]] %s699_s17 }
 0x2a5   :  { %617 = sst [smem:[#allocation8 + $0xe]] %s699_s17 }
 0x2a6   :  { %s626_s25 = sshll.u32 %s2506_s23, 4  ;;  %619 = sst [smem:[#allocation8 + $0xf]] %s699_s17  ;;  %s627_s25 = int_to_ptr.vmem [resolvable:$true] %s626_s25 }
 0x2a7   :  { %s679_s8 = scalar_lea.vmem %s627_s25, 16  ;;  %p684_p12 = scmp.lt.s32.totalorder %s627_s25, %s627_s25 }
 0x2a8   :  { %p680_p11 = scmp.ne.s32.totalorder %s627_s25, %s679_s8  ;;  %p685_p13 = scmp.lt.s32.totalorder %s679_s8, %s679_s8 }
 0x2aa   :  { %p686_p0 = por %p685_p13, %p684_p12 }
 0x2ac   :  { %p687_p1 = pnand %p686_p0, %p680_p11 }
 0x2ae   :  { %690 = shalt.err (!%p687_p1)
}
 0x2af   :  { %s700_s18 = smov [#allocation8]  }
 0x2b0   :  { %629 = dma.smem_to_vmem %s700_s18, 16, %s627_s25, [#allocation5]  }
 0x2b1   :  { %695 = dma.done.wait [#allocation5], 16  }
 0x2b2   :  { %696 = vsyncadd [#allocation5], 4294967280 }
 0x2b3   :  { %633 = sfence }
 0x2b4   :  { %634 = vsyncpa [#allocation4], 1 }
 0x2b5   :  { %635 = vsyncpa [#allocation7], 1 }
 0x2b6   :  { %636 = vsyncpa [#allocation5], 1 }

</bundles_post_ra>
